<compile_context>
chip_gen: v7x
topology: tpu7x:2x2x1
jax: 0.10.0
libtpu: 0.0.40
codegen_flags: <defaults>
</compile_context>

<pallas_src>
import functools
import jax
import jax.numpy as jnp
from jax.experimental import pallas as pl
from jax.experimental.pallas import tpu as pltpu

EPS = 1e-5


# ----------------------------------------------------------------------------
# Fused kernel: [pre-BN affine] -> 3x3 conv (im2col, 1 matmul) -> bias -> ReLU
#               -> store y  +  accumulate per-channel sum / sum-of-squares
# ----------------------------------------------------------------------------
def _conv3x3_bn_relu_stats_kernel(H, W, Cin, Cout,
                                  xp_ref, w_ref, b_ref, scale_ref, shift_ref,
                                  o_ref, sum_ref, sq_ref):
    # Zero the batch-stat accumulators on the first grid step.
    @pl.when(pl.program_id(0) == 0)
    def _():
        sum_ref[...] = jnp.zeros_like(sum_ref)
        sq_ref[...] = jnp.zeros_like(sq_ref)

    # Fused BatchNorm of the *previous* layer applied to this conv's input.
    # The halo of xp was pre-filled with (-shift/scale), so scale*halo+shift == 0,
    # i.e. the conv still sees a zero-padded BN output (PyTorch semantics).
    scale = scale_ref[0][None, None, :]                      # (1, 1, Cin)
    shift = shift_ref[0][None, None, :]
    xp = xp_ref[0] * scale + shift                           # (H+2, W+2, Cin) f32

    # im2col: build one (H*W, 9*Cin) matrix so the MXU sees a single matmul
    # with M = H*W and K = 9*Cin instead of nine K=Cin matmuls.
    cols = []
    for dy in range(3):
        for dx in range(3):
            cols.append(xp[dy:dy + H, dx:dx + W, :].reshape(H * W, Cin))
    col = jnp.concatenate(cols, axis=1)                      # (H*W, 9*Cin)

    acc = jax.lax.dot_general(
        col, w_ref[...],                                     # (9*Cin, Cout)
        dimension_numbers=(((1,), (0,)), ((), ())),
        preferred_element_type=jnp.float32)                  # (H*W, Cout)
    acc = jnp.maximum(acc + b_ref[0][None, :], 0.0)          # bias + ReLU

    o_ref[0] = acc.reshape(H, W, Cout)

    # Per-channel batch statistics for this layer's BatchNorm — fused, so the
    # conv output is never re-read from HBM just to compute BN stats.
    sum_ref[...] += jnp.sum(acc, axis=0)[None, :]
    sq_ref[...] += jnp.sum(acc * acc, axis=0)[None, :]


def conv3x3_relu_stats(xp, w9, b, scale_in, shift_in):
    """Fused conv layer.

    xp:       (N, H+2, W+2, Cin) pre-padded input; halo value must satisfy
              scale_in*halo + shift_in == 0.
    w9:       (9*Cin, Cout) reshaped HWIO weights.
    b:        (Cout,)
    scale_in, shift_in: (Cin,) affine fused onto the input (identity for layer 1).
    Returns (y, chan_sum, chan_sumsq) with y: (N, H, W, Cout).
    """
    N, Hp, Wp, Cin = xp.shape
    H, W = Hp - 2, Wp - 2
    Cout = w9.shape[-1]
    kernel = functools.partial(_conv3x3_bn_relu_stats_kernel, H, W, Cin, Cout)
    return pl.pallas_call(
        kernel,
        out_shape=(
            jax.ShapeDtypeStruct((N, H, W, Cout), jnp.float32),
            jax.ShapeDtypeStruct((1, Cout), jnp.float32),
            jax.ShapeDtypeStruct((1, Cout), jnp.float32),
        ),
        grid_spec=pltpu.PrefetchScalarGridSpec(
            num_scalar_prefetch=0,
            grid=(N,),
            in_specs=[
                pl.BlockSpec((1, H + 2, W + 2, Cin), lambda n: (n, 0, 0, 0)),
                pl.BlockSpec((9 * Cin, Cout), lambda n: (0, 0)),
                pl.BlockSpec((1, Cout), lambda n: (0, 0)),
                pl.BlockSpec((1, Cin), lambda n: (0, 0)),
                pl.BlockSpec((1, Cin), lambda n: (0, 0)),
            ],
            out_specs=(
                pl.BlockSpec((1, H, W, Cout), lambda n: (n, 0, 0, 0)),
                pl.BlockSpec((1, Cout), lambda n: (0, 0)),
                pl.BlockSpec((1, Cout), lambda n: (0, 0)),
            ),
        ),
        # The (1, Cout) stat accumulators are shared across the batch axis, so
        # this axis must execute sequentially ("arbitrary"), never "parallel".
        compiler_params=pltpu.CompilerParams(
            dimension_semantics=("arbitrary",),
            vmem_limit_bytes=32 * 1024 * 1024),
    )(xp, w9, b.reshape(1, Cout),
      scale_in.reshape(1, Cin), shift_in.reshape(1, Cin))


# ----------------------------------------------------------------------------
# Final BN apply: lane-dense elementwise y*scale + shift on a (N, H, W*C) view
# ----------------------------------------------------------------------------
def _bn_apply_kernel(y_ref, scale_ref, shift_ref, o_ref):
    o_ref[0] = y_ref[0] * scale_ref[0][None, :] + shift_ref[0][None, :]


def bn_apply_lane_dense(y_nhwc, scale, shift):
    N, H, W, C = y_nhwc.shape
    y2 = y_nhwc.reshape(N, H, W * C)          # free row-major view, lane-dense
    scale_t = jnp.tile(scale, W).reshape(1, W * C)
    shift_t = jnp.tile(shift, W).reshape(1, W * C)
    out = pl.pallas_call(
        _bn_apply_kernel,
        out_shape=jax.ShapeDtypeStruct((N, H, W * C), jnp.float32),
        grid_spec=pltpu.PrefetchScalarGridSpec(
            num_scalar_prefetch=0,
            grid=(N,),
            in_specs=[
                pl.BlockSpec((1, H, W * C), lambda n: (n, 0, 0)),
                pl.BlockSpec((1, W * C), lambda n: (0, 0)),
                pl.BlockSpec((1, W * C), lambda n: (0, 0)),
            ],
            out_specs=pl.BlockSpec((1, H, W * C), lambda n: (n, 0, 0)),
        ),
        compiler_params=pltpu.CompilerParams(
            dimension_semantics=("parallel",),
            vmem_limit_bytes=32 * 1024 * 1024),
    )(y2, scale_t, shift_t)
    return out.reshape(N, H, W, C)


# ----------------------------------------------------------------------------
# Helpers
# ----------------------------------------------------------------------------
def _pad_halo(x, pad_val):
    """1-pixel spatial halo with a per-channel constant value."""
    N, H, W, C = x.shape
    base = jnp.broadcast_to(pad_val.reshape(1, 1, 1, C), (N, H + 2, W + 2, C))
    return base.at[:, 1:H + 1, 1:W + 1, :].set(x)


def _bn_scale_shift(chan_sum, chan_sumsq, count, gamma, beta):
    mean = chan_sum / count
    # biased variance; clamp at 0 to guard E[x^2]-E[x]^2 cancellation.
    var = jnp.maximum(chan_sumsq / count - mean * mean, 0.0)
    scale = gamma / jnp.sqrt(var + EPS)
    shift = beta - mean * scale
    return scale, shift


# ----------------------------------------------------------------------------
# inconv forward = (conv3x3 -> ReLU -> BN) x 2, BN in training mode
# ----------------------------------------------------------------------------
def inconv_forward(x_nchw, params):
    x = jnp.transpose(x_nchw, (0, 2, 3, 1)).astype(jnp.float32)   # NCHW -> NHWC
    N, H, W, Cin = x.shape
    Cout = params["w1"].shape[-1]
    cnt = float(N * H * W)

    # ---- layer 1: conv + bias + ReLU, BN stats fused ----
    one = jnp.ones((Cin,), jnp.float32)
    zero = jnp.zeros((Cin,), jnp.float32)
    xp1 = _pad_halo(x, zero)                                       # plain zero halo
    y1, s1, sq1 = conv3x3_relu_stats(
        xp1, params["w1"].reshape(9 * Cin, Cout), params["b1"], one, zero)
    scale1, shift1 = _bn_scale_shift(s1[0], sq1[0], cnt, params["g1"], params["be1"])

    # ---- layer 2: BN(layer 1) fused into the conv input, BN stats fused ----
    # halo value v solves scale1*v + shift1 == 0 -> conv sees a zero-padded BN output.
    pad_val = -shift1 / scale1
    xp2 = _pad_halo(y1, pad_val)
    y2, s2, sq2 = conv3x3_relu_stats(
        xp2, params["w2"].reshape(9 * Cout, Cout), params["b2"], scale1, shift1)
    scale2, shift2 = _bn_scale_shift(s2[0], sq2[0], cnt, params["g2"], params["be2"])

    # ---- final BN apply (lane-dense) ----
    y = bn_apply_lane_dense(y2, scale2, shift2)
    return jnp.transpose(y, (0, 3, 1, 2))                          # NHWC -> NCHW


# ----------------------------------------------------------------------------
# Plain-JAX reference (correctness check only)
# ----------------------------------------------------------------------------
def _ref_forward(x_nchw, p):
    def conv(x, w, b):
        y = jax.lax.conv_general_dilated(
            x, w, (1, 1), "SAME", dimension_numbers=("NCHW", "HWIO", "NCHW"))
        return y + b[None, :, None, None]

    def bn(x, g, be):
        mean = x.mean(axis=(0, 2, 3), keepdims=True)
        var = x.var(axis=(0, 2, 3), keepdims=True)
        return (x - mean) / jnp.sqrt(var + EPS) * g[None, :, None, None] \
            + be[None, :, None, None]

    y = jnp.maximum(conv(x_nchw, p["w1"], p["b1"]), 0.0)
    y = bn(y, p["g1"], p["be1"])
    y = jnp.maximum(conv(y, p["w2"], p["b2"]), 0.0)
    y = bn(y, p["g2"], p["be2"])
    return y


def init_params(key, in_ch, out_ch):
    ks = jax.random.split(key, 4)

    def conv_init(kw, kb, cin, cout):
        fan_in = cin * 9
        bound = 1.0 / jnp.sqrt(fan_in)
        w = jax.random.uniform(kw, (3, 3, cin, cout), jnp.float32, -bound, bound)
        b = jax.random.uniform(kb, (cout,), jnp.float32, -bound, bound)
        return w, b

    w1, b1 = conv_init(ks[0], ks[1], in_ch, out_ch)
    w2, b2 = conv_init(ks[2], ks[3], out_ch, out_ch)
    return dict(
        w1=w1, b1=b1,
        g1=jnp.ones((out_ch,), jnp.float32), be1=jnp.zeros((out_ch,), jnp.float32),
        w2=w2, b2=b2,
        g2=jnp.ones((out_ch,), jnp.float32), be2=jnp.zeros((out_ch,), jnp.float32),
    )


if __name__ == "__main__":
    key = jax.random.PRNGKey(0)
    kx, kp = jax.random.split(key)
    N, C_in, C_out, H, W = 2, 4, 8, 16, 16
    x = jax.random.normal(kx, (N, C_in, H, W), jnp.float32)
    params = init_params(kp, C_in, C_out)

    out = jax.block_until_ready(inconv_forward(x, params))
    ref = jax.block_until_ready(_ref_forward(x, params))

    assert out.shape == (N, C_out, H, W)
    assert jnp.allclose(out, ref, atol=1e-4, rtol=1e-4), \
        f"max abs diff {jnp.max(jnp.abs(out - ref))}"
    print("KERNEL_OK")
</pallas_src>

<mosaic_0001>
module attributes {stable_mosaic.version = 11 : i64} {
  func.func @_conv3x3_bn_relu_stats_kernel(%arg0: i32, %arg1: memref<1x18x18x4xf32, #tpu.memory_space<vmem>>, %arg2: memref<36x8xf32, #tpu.memory_space<vmem>>, %arg3: memref<1x8xf32, #tpu.memory_space<vmem>>, %arg4: memref<1x4xf32, #tpu.memory_space<vmem>>, %arg5: memref<1x4xf32, #tpu.memory_space<vmem>>, %arg6: memref<1x16x16x8xf32, #tpu.memory_space<vmem>>, %arg7: memref<1x8xf32, #tpu.memory_space<vmem>>, %arg8: memref<1x8xf32, #tpu.memory_space<vmem>>) attributes {dimension_semantics = [#tpu.dimension_semantics<arbitrary>], iteration_bounds = array<i64: 2>, scalar_prefetch = 0 : i64, scratch_operands = 0 : i64, tpu.core_type = #tpu.core_type<tc>, window_params = [{transform_indices = @transform_0, window_bounds = array<i64: 1, 18, 18, 4>}, {pipeline_mode = #tpu.pipeline_mode<synchronous>, transform_indices = @transform_1, window_bounds = array<i64: 36, 8>}, {pipeline_mode = #tpu.pipeline_mode<synchronous>, transform_indices = @transform_2, window_bounds = array<i64: 1, 8>}, {pipeline_mode = #tpu.pipeline_mode<synchronous>, transform_indices = @transform_3, window_bounds = array<i64: 1, 4>}, {pipeline_mode = #tpu.pipeline_mode<synchronous>, transform_indices = @transform_4, window_bounds = array<i64: 1, 4>}, {transform_indices = @transform_5, window_bounds = array<i64: 1, 16, 16, 8>}, {pipeline_mode = #tpu.pipeline_mode<synchronous>, transform_indices = @transform_6, window_bounds = array<i64: 1, 8>}, {pipeline_mode = #tpu.pipeline_mode<synchronous>, transform_indices = @transform_7, window_bounds = array<i64: 1, 8>}]} {
    %c0_i32 = arith.constant 0 : i32
    %0 = arith.cmpi eq, %arg0, %c0_i32 : i32
    %1 = arith.extui %0 : i1 to i32
    %c0_i32_0 = arith.constant 0 : i32
    %2 = arith.cmpi ne, %1, %c0_i32_0 : i32
    scf.if %2 {
      %cst_27 = arith.constant 0.000000e+00 : f32
      %58 = vector.broadcast %cst_27 : f32 to vector<1x8xf32>
      %c0_28 = arith.constant 0 : index
      %c0_29 = arith.constant 0 : index
      %59 = vector.load %arg7[%c0_28, %c0_29] : memref<1x8xf32, #tpu.memory_space<vmem>>, vector<1x8xf32>
      tpu.vector_store %arg7[%c0_28, %c0_29], %58 {strides = array<i32>} : memref<1x8xf32, #tpu.memory_space<vmem>>, vector<1x8xf32>,
      %cst_30 = arith.constant 0.000000e+00 : f32
      %60 = vector.broadcast %cst_30 : f32 to vector<1x8xf32>
      %c0_31 = arith.constant 0 : index
      %c0_32 = arith.constant 0 : index
      %61 = vector.load %arg8[%c0_31, %c0_32] : memref<1x8xf32, #tpu.memory_space<vmem>>, vector<1x8xf32>
      tpu.vector_store %arg8[%c0_31, %c0_32], %60 {strides = array<i32>} : memref<1x8xf32, #tpu.memory_space<vmem>>, vector<1x8xf32>,
    } else {
    }
    %c0 = arith.constant 0 : index
    %c0_1 = arith.constant 0 : index
    %3 = vector.load %arg4[%c0, %c0_1] : memref<1x4xf32, #tpu.memory_space<vmem>>, vector<1x4xf32>
    %4 = vector.shape_cast %3 : vector<1x4xf32> to vector<4xf32>
    %5 = vector.shape_cast %4 : vector<4xf32> to vector<1x1x4xf32>
    %c0_2 = arith.constant 0 : index
    %c0_3 = arith.constant 0 : index
    %6 = vector.load %arg5[%c0_2, %c0_3] : memref<1x4xf32, #tpu.memory_space<vmem>>, vector<1x4xf32>
    %7 = vector.shape_cast %6 : vector<1x4xf32> to vector<4xf32>
    %8 = vector.shape_cast %7 : vector<4xf32> to vector<1x1x4xf32>
    %c0_4 = arith.constant 0 : index
    %c0_5 = arith.constant 0 : index
    %c0_6 = arith.constant 0 : index
    %c0_7 = arith.constant 0 : index
    %9 = vector.load %arg1[%c0_4, %c0_5, %c0_6, %c0_7] : memref<1x18x18x4xf32, #tpu.memory_space<vmem>>, vector<1x18x18x4xf32>
    %10 = vector.shape_cast %9 : vector<1x18x18x4xf32> to vector<18x18x4xf32>
    %11 = vector.broadcast %5 : vector<1x1x4xf32> to vector<18x18x4xf32>
    %12 = arith.mulf %10, %11 : vector<18x18x4xf32>
    %13 = vector.broadcast %8 : vector<1x1x4xf32> to vector<18x18x4xf32>
    %14 = arith.addf %12, %13 : vector<18x18x4xf32>
    %15 = vector.extract_strided_slice %14 {offsets = [0, 0, 0], sizes = [16, 16, 4], strides = [1, 1, 1]} : vector<18x18x4xf32> to vector<16x16x4xf32>
    %16 = vector.shape_cast %15 : vector<16x16x4xf32> to vector<256x4xf32>
    %17 = vector.extract_strided_slice %14 {offsets = [0, 1, 0], sizes = [16, 16, 4], strides = [1, 1, 1]} : vector<18x18x4xf32> to vector<16x16x4xf32>
    %18 = vector.shape_cast %17 : vector<16x16x4xf32> to vector<256x4xf32>
    %19 = vector.extract_strided_slice %14 {offsets = [0, 2, 0], sizes = [16, 16, 4], strides = [1, 1, 1]} : vector<18x18x4xf32> to vector<16x16x4xf32>
    %20 = vector.shape_cast %19 : vector<16x16x4xf32> to vector<256x4xf32>
    %21 = vector.extract_strided_slice %14 {offsets = [1, 0, 0], sizes = [16, 16, 4], strides = [1, 1, 1]} : vector<18x18x4xf32> to vector<16x16x4xf32>
    %22 = vector.shape_cast %21 : vector<16x16x4xf32> to vector<256x4xf32>
    %23 = vector.extract_strided_slice %14 {offsets = [1, 1, 0], sizes = [16, 16, 4], strides = [1, 1, 1]} : vector<18x18x4xf32> to vector<16x16x4xf32>
    %24 = vector.shape_cast %23 : vector<16x16x4xf32> to vector<256x4xf32>
    %25 = vector.extract_strided_slice %14 {offsets = [1, 2, 0], sizes = [16, 16, 4], strides = [1, 1, 1]} : vector<18x18x4xf32> to vector<16x16x4xf32>
    %26 = vector.shape_cast %25 : vector<16x16x4xf32> to vector<256x4xf32>
    %27 = vector.extract_strided_slice %14 {offsets = [2, 0, 0], sizes = [16, 16, 4], strides = [1, 1, 1]} : vector<18x18x4xf32> to vector<16x16x4xf32>
    %28 = vector.shape_cast %27 : vector<16x16x4xf32> to vector<256x4xf32>
    %29 = vector.extract_strided_slice %14 {offsets = [2, 1, 0], sizes = [16, 16, 4], strides = [1, 1, 1]} : vector<18x18x4xf32> to vector<16x16x4xf32>
    %30 = vector.shape_cast %29 : vector<16x16x4xf32> to vector<256x4xf32>
    %31 = vector.extract_strided_slice %14 {offsets = [2, 2, 0], sizes = [16, 16, 4], strides = [1, 1, 1]} : vector<18x18x4xf32> to vector<16x16x4xf32>
    %32 = vector.shape_cast %31 : vector<16x16x4xf32> to vector<256x4xf32>
    %33 = tpu.concatenate %16, %18, %20, %22, %24, %26, %28, %30, %32 in 1 : vector<256x4xf32>, vector<256x4xf32>, vector<256x4xf32>, vector<256x4xf32>, vector<256x4xf32>, vector<256x4xf32>, vector<256x4xf32>, vector<256x4xf32>, vector<256x4xf32> -> vector<256x36xf32>
    %c0_8 = arith.constant 0 : index
    %c0_9 = arith.constant 0 : index
    %34 = vector.load %arg2[%c0_8, %c0_9] : memref<36x8xf32, #tpu.memory_space<vmem>>, vector<36x8xf32>
    %cst = arith.constant dense<0.000000e+00> : vector<256x8xf32>
    %35 = tpu.matmul %33, %34, %cst {dimension_numbers = #tpu.dot_dimension_numbers<[1], [0], [0], [1], [0, 0, 1, 1], [], []>} : vector<256x36xf32>, vector<36x8xf32>, vector<256x8xf32> -> vector<256x8xf32>
    %c0_10 = arith.constant 0 : index
    %c0_11 = arith.constant 0 : index
    %36 = vector.load %arg3[%c0_10, %c0_11] : memref<1x8xf32, #tpu.memory_space<vmem>>, vector<1x8xf32>
    %37 = vector.shape_cast %36 : vector<1x8xf32> to vector<8xf32>
    %38 = vector.shape_cast %37 : vector<8xf32> to vector<1x8xf32>
    %39 = vector.broadcast %38 : vector<1x8xf32> to vector<256x8xf32>
    %40 = arith.addf %35, %39 : vector<256x8xf32>
    %cst_12 = arith.constant 0.000000e+00 : f32
    %41 = vector.broadcast %cst_12 : f32 to vector<256x8xf32>
    %42 = arith.maximumf %40, %41 : vector<256x8xf32>
    %43 = vector.shape_cast %42 : vector<256x8xf32> to vector<16x16x8xf32>
    %c0_13 = arith.constant 0 : index
    %c0_14 = arith.constant 0 : index
    %c0_15 = arith.constant 0 : index
    %c0_16 = arith.constant 0 : index
    %44 = vector.load %arg6[%c0_13, %c0_14, %c0_15, %c0_16] : memref<1x16x16x8xf32, #tpu.memory_space<vmem>>, vector<1x16x16x8xf32>
    %45 = vector.shape_cast %44 : vector<1x16x16x8xf32> to vector<16x16x8xf32>
    %46 = vector.shape_cast %43 : vector<16x16x8xf32> to vector<1x16x16x8xf32>
    tpu.vector_store %arg6[%c0_13, %c0_14, %c0_15, %c0_16], %46 {strides = array<i32>} : memref<1x16x16x8xf32, #tpu.memory_space<vmem>>, vector<1x16x16x8xf32>,
    %c0_17 = arith.constant 0 : index
    %c0_18 = arith.constant 0 : index
    %47 = vector.load %arg7[%c0_17, %c0_18] : memref<1x8xf32, #tpu.memory_space<vmem>>, vector<1x8xf32>
    %cst_19 = arith.constant dense<0.000000e+00> : vector<8xf32>
    %48 = vector.multi_reduction <add>, %42, %cst_19 [0] : vector<256x8xf32> to vector<8xf32>
    %49 = vector.shape_cast %48 : vector<8xf32> to vector<1x8xf32>
    %50 = arith.addf %47, %49 : vector<1x8xf32>
    %c0_20 = arith.constant 0 : index
    %c0_21 = arith.constant 0 : index
    %51 = vector.load %arg7[%c0_20, %c0_21] : memref<1x8xf32, #tpu.memory_space<vmem>>, vector<1x8xf32>
    tpu.vector_store %arg7[%c0_20, %c0_21], %50 {strides = array<i32>} : memref<1x8xf32, #tpu.memory_space<vmem>>, vector<1x8xf32>,
    %c0_22 = arith.constant 0 : index
    %c0_23 = arith.constant 0 : index
    %52 = vector.load %arg8[%c0_22, %c0_23] : memref<1x8xf32, #tpu.memory_space<vmem>>, vector<1x8xf32>
    %53 = arith.mulf %42, %42 : vector<256x8xf32>
    %cst_24 = arith.constant dense<0.000000e+00> : vector<8xf32>
    %54 = vector.multi_reduction <add>, %53, %cst_24 [0] : vector<256x8xf32> to vector<8xf32>
    %55 = vector.shape_cast %54 : vector<8xf32> to vector<1x8xf32>
    %56 = arith.addf %52, %55 : vector<1x8xf32>
    %c0_25 = arith.constant 0 : index
    %c0_26 = arith.constant 0 : index
    %57 = vector.load %arg8[%c0_25, %c0_26] : memref<1x8xf32, #tpu.memory_space<vmem>>, vector<1x8xf32>
    tpu.vector_store %arg8[%c0_25, %c0_26], %56 {strides = array<i32>} : memref<1x8xf32, #tpu.memory_space<vmem>>, vector<1x8xf32>,
    return
  }
  func.func @transform_0(%arg0: i32) -> (i32, i32, i32, i32) {
    %c0_i32 = arith.constant 0 : i32
    %c0_i32_0 = arith.constant 0 : i32
    %c0_i32_1 = arith.constant 0 : i32
    %c0_i32_2 = arith.constant 0 : i32
    return %arg0, %c0_i32, %c0_i32_0, %c0_i32_1 : i32, i32, i32, i32
  }
  func.func @transform_1(%arg0: i32) -> (i32, i32) {
    %c0_i32 = arith.constant 0 : i32
    %c0_i32_0 = arith.constant 0 : i32
    %c0_i32_1 = arith.constant 0 : i32
    return %c0_i32, %c0_i32_0 : i32, i32
  }
  func.func @transform_2(%arg0: i32) -> (i32, i32) {
    %c0_i32 = arith.constant 0 : i32
    %c0_i32_0 = arith.constant 0 : i32
    %c0_i32_1 = arith.constant 0 : i32
    return %c0_i32, %c0_i32_0 : i32, i32
  }
  func.func @transform_3(%arg0: i32) -> (i32, i32) {
    %c0_i32 = arith.constant 0 : i32
    %c0_i32_0 = arith.constant 0 : i32
    %c0_i32_1 = arith.constant 0 : i32
    return %c0_i32, %c0_i32_0 : i32, i32
  }
  func.func @transform_4(%arg0: i32) -> (i32, i32) {
    %c0_i32 = arith.constant 0 : i32
    %c0_i32_0 = arith.constant 0 : i32
    %c0_i32_1 = arith.constant 0 : i32
    return %c0_i32, %c0_i32_0 : i32, i32
  }
  func.func @transform_5(%arg0: i32) -> (i32, i32, i32, i32) {
    %c0_i32 = arith.constant 0 : i32
    %c0_i32_0 = arith.constant 0 : i32
    %c0_i32_1 = arith.constant 0 : i32
    %c0_i32_2 = arith.constant 0 : i32
    return %arg0, %c0_i32, %c0_i32_0, %c0_i32_1 : i32, i32, i32, i32
  }
  func.func @transform_6(%arg0: i32) -> (i32, i32) {
    %c0_i32 = arith.constant 0 : i32
    %c0_i32_0 = arith.constant 0 : i32
    %c0_i32_1 = arith.constant 0 : i32
    return %c0_i32, %c0_i32_0 : i32, i32
  }
  func.func @transform_7(%arg0: i32) -> (i32, i32) {
    %c0_i32 = arith.constant 0 : i32
    %c0_i32_0 = arith.constant 0 : i32
    %c0_i32_1 = arith.constant 0 : i32
    return %c0_i32, %c0_i32_0 : i32, i32
  }
}

</mosaic_0001>

<bundles_post_ra>
// kernel: tpu_custom_call.1
= control target key start
LH: loop header
LB: loop body
LE: loop exit
PB: predicated region body
PF: predicated region fallthrough
CT: control target
= control target key end

     0   :  { %13 = vsyncpa [#allocation3], 0  ;;  %s4622_s0 = inlined_call_operand.vmem [shape: f32[2,18,18,4], index: 0, kind: input, shape index: {}]   ;;  %s4623_s1 = inlined_call_operand.vmem [shape: f32[36,8], index: 1, kind: input, shape index: {}]   ;;  %s4624_s2 = inlined_call_operand.vmem [shape: f32[1,8], index: 2, kind: input, shape index: {}]   ;;  %s4625_s3 = inlined_call_operand.vmem [shape: f32[1,4], index: 3, kind: input, shape index: {}]   ;;  %s4626_s4 = inlined_call_operand.vmem [shape: f32[1,4], index: 4, kind: input, shape index: {}]   ;;  %s4627_s5 = inlined_call_operand.vmem [shape: f32[2,16,16,8], index: 5, kind: output, shape index: {0}]   ;;  %s4628_s6 = inlined_call_operand.hbm [shape: f32[1,8], index: 6, kind: output, shape index: {1}]   ;;  %s4629_s7 = inlined_call_operand.hbm [shape: f32[1,8], index: 7, kind: output, shape index: {2}]  }
   0x1   :  { %14 = vsyncpa [#allocation5], 0  ;;  %s2721_s24 = smov 0  }
   0x2 LB: > { %s2727_s25 = sadd.s32 4294967295, %s2668_s24   ;;  %p2411_p0 = scmp.ge.s32.totalorder %s2668_s24, 1  ;;  %s2668_s24 = sphi %s2721_s24, %s20_s24  }
   0x3   : > { %p234_p1 = scmp.lt.s32.totalorder %s2668_s24, 3 }
   0x5   : > { %p235_p2 = pnand %p2411_p0, %p234_p1 }
   0x7   : > { %238 = sbr.rel (%p235_p2) target bundleno = 934 (0x3a6), region = 40 }
   0xe   : > { %p266_p3 = scmp.lt.s32.totalorder %s2727_s25, 1  ;;  %p2415_p4 = scmp.ne.s32.totalorder %s2727_s25, 0 }
   0xf   : > { %vm280_vm0 = vcmask (!%p2415_p4), 57344   ;;  %v2670_v0 = vmov (!%p2415_p4), 0.0  }
  0x10   : > { %s267_s26 = scalar_select %p266_p3, %s2727_s25, 1 }
  0x11   : > { %279 = sbr.rel (%p2415_p4) target bundleno = 24 (0x18), region = 44  ;;  %281 = vst.msk [vmem:[#allocation2] sm:$0x1] (!%p2415_p4), %vm280_vm0, %v2670_v0  ;;  %282 = vst.msk [vmem:[#allocation4] sm:$0x1] (!%p2415_p4), %vm280_vm0, %v2670_v0 }
  0x12   : > { %s2568_s27 = smul.u32 432, %s267_s26  ;;  %s2458_s28 = sshll.u32 %s267_s26, 8 }
  0x13   : > { %s2736_s8 = scalar_lea.vmem %s4627_s5, %s2458_s28 }
  0x14   : > { %s2741_s11 = scalar_lea.vmem %s4622_s0, %s2568_s27 }
  0x18 PF: > { %v2747_v1 = vld [vmem:[%s4625_s3] ss:$0 sm:$0xff]  ;;  %v288_v3 = vld [vmem:[%s2741_s11 + $0x18] sm:$0xff]  ;;  %v286_v7 = vld [vmem:[%s2741_s11 + $0x8] sm:$0xff]  ;;  %vm507_vm1 = vcmask 1046528   ;;  %s2671_s16 = smov 4  }
  0x19   : > { %v2752_v2 = vld [vmem:[%s4626_s4] ss:$0 sm:$0xff]  ;;  %v348_v5 = vmul.f32 %v2747_v1, %v288_v3  ;;  %v346_v10 = vmul.f32 %v2747_v1, %v286_v7  ;;  %v290_v11 = vld [vmem:[%s2741_s11 + $0x28] sm:$0x3]  ;;  %v287_v12 = vld [vmem:[%s2741_s11 + $0x10] sm:$0x3] }
  0x1a   : > { %v289_v4 = vld [vmem:[%s2741_s11 + $0x20] sm:$0xff]  ;;  %v292_v13 = vld [vmem:[%s2741_s11 + $0x38] sm:$0xff]  ;;  %v350_v15 = vmul.f32 %v2747_v1, %v290_v11  ;;  %v347_v16 = vmul.f32 %v2747_v1, %v287_v12  ;;  %v291_v23 = vld [vmem:[%s2741_s11 + $0x30] sm:$0xff]  ;;  %vm588_vm2 = vcmask 1045504   ;;  %s2672_s17 = smov 8   ;;  %s2673_s18 = smov 12  }
  0x1b   : > { %v285_v6 = vld [vmem:[%s2741_s11] sm:$0xff]  ;;  %v349_v8 = vmul.f32 %v2747_v1, %v289_v4  ;;  %v2766_v14 = vadd.f32 %v2752_v2, %v348_v5  ;;  %v352_v18 = vmul.f32 %v2747_v1, %v292_v13  ;;  %v2779_v21 = vadd.f32 %v2752_v2, %v346_v10  ;;  %v295_v28 = vld [vmem:[%s2741_s11 + $0x50] sm:$0xff]  ;;  %v296_v37 = vld [vmem:[%s2741_s11 + $0x58] sm:$0x3]  ;;  %s2674_s23 = smov 16   ;;  %s2675_s30 = smov 20  }
  0x1c   : > { %v345_v9 = vmul.f32 %v2747_v1, %v285_v6  ;;  %v293_v17 = vld [vmem:[%s2741_s11 + $0x40] sm:$0x3]  ;;  %v2785_v25 = vadd.f32 %v2752_v2, %v350_v15  ;;  %v2788_v26 = vadd.f32 %v2752_v2, %v347_v16  ;;  %v351_v36 = vmul.f32 %v2747_v1, %v291_v23  ;;  %v294_v38 = vld [vmem:[%s2741_s11 + $0x48] sm:$0xff]  ;;  %v299_v44 = vld [vmem:[%s2741_s11 + $0x70] sm:$0x3]  ;;  %s2676_s9 = smov 24  }
  0x1d   : > { %v2773_v19 = vadd.f32 %v2752_v2, %v349_v8  ;;  %v353_v22 = vmul.f32 %v2747_v1, %v293_v17  ;;  %v513_v24 = vrot.slane %v2766_v14, 1  ;;  %v2791_v27 = vadd.f32 %v2752_v2, %v352_v18  ;;  %v298_v43 = vld [vmem:[%s2741_s11 + $0x68] sm:$0xff]  ;;  %v297_v45 = vld [vmem:[%s2741_s11 + $0x60] sm:$0xff]  ;;  %v300_v62 = vld [vmem:[%s2741_s11 + $0x78] sm:$0xff]  ;;  %s2677_s13 = smov 28   ;;  %s2678_s14 = smov 32  }
  0x1e   : > { %v2776_v20 = vadd.f32 %v2752_v2, %v345_v9  ;;  %v509_v31 = vrot.slane %v2779_v21, 1  ;;  %v516_v33 = vrot.slane %v2785_v25, 1  ;;  %v511_v34 = vrot.slane %v2788_v26, 1  ;;  %v301_v48 = vld [vmem:[%s2741_s11 + $0x80] sm:$0xff]  ;;  %v302_v57 = vld [vmem:[%s2741_s11 + $0x88] sm:$0x3] }
  0x1f   : > { %v514_v29 = vrot.slane %v2773_v19, 1  ;;  %v2798_v32 = vadd.f32 %v2752_v2, %v353_v22  ;;  %v519_v35 = vrot.slane %v2791_v27, 1  ;;  %v355_v42 = vmul.f32 %v2747_v1, %v295_v28  ;;  %v304_v10 = vld [vmem:[%s2741_s11 + $0x98] sm:$0xff]  ;;  %v305_v11 = vld [vmem:[%s2741_s11 + $0xa0] sm:$0x3]  ;;  %v303_v12 = vld [vmem:[%s2741_s11 + $0x90] sm:$0xff] }
  0x20   : > { %v508_v30 = vrot.slane %v2776_v20, 1  ;;  %v2822_v47 = vadd.f32 %v2752_v2, %v351_v36  ;;  %v512_v49 = vsel %vm507_vm1, %v509_v31, %v511_v34  ;;  %v356_v50 = vmul.f32 %v2747_v1, %v296_v37  ;;  %v306_v34 = vld [vmem:[%s2741_s11 + $0xa8] sm:$0xff]  ;;  %p2577_p5 = scmp.eq.s32.totalorder %s2727_s25, 1  ;;  %s2680_s21 = smov [#allocation4]  }
  0x21   : > { %v2807_v39 = vsel %vm507_vm1, %v513_v24, %v514_v29  ;;  %v521_v41 = vrot.slane %v2798_v32, 1  ;;  %v2819_v46 = vsel %vm507_vm1, %v514_v29, %v516_v33  ;;  %v2828_v51 = vadd.f32 %v2752_v2, %v355_v42  ;;  %v308_v33 = vld [vmem:[%s2741_s11 + $0xb8] sm:$0x3]  ;;  %s2332_s22 = sshll.u32 %s2680_s21, 4  ;;  %s4566_s22 = int_to_ptr.vmem [resolvable:$true] %s2332_s22 }
  0x22   : > { %v510_v40 = vsel %vm507_vm1, %v508_v30, %v509_v31  ;;  %699 = vrot.lane.b32.xlu1 %v2807_v39, %s2671_s16  ;;  %4734 = vst [vmem:[#allocation8_spill] sm:$0xff] %v2819_v46  ;;  %v354_v52 = vmul.f32 %v2747_v1, %v294_v38  ;;  %v518_v53 = vrot.slane %v2822_v47, 1  ;;  %v358_v54 = vmul.f32 %v2747_v1, %v298_v43  ;;  %v307_v31 = vld [vmem:[%s2741_s11 + $0xb0] sm:$0xff]  ;;  %v310_v38 = vld [vmem:[%s2741_s11 + $0xc8] sm:$0xff] }
  0x23   : > { %695 = vrot.lane.b32.xlu0 %v510_v40, %s2671_s16  ;;  %v359_v55 = vmul.f32 %v2747_v1, %v299_v44  ;;  %v357_v56 = vmul.f32 %v2747_v1, %v297_v45  ;;  %v2837_v58 = vsel %vm507_vm1, %v519_v35, %v521_v41  ;;  %v2840_v59 = vadd.f32 %v2752_v2, %v356_v50  ;;  %v311_v44 = vld [vmem:[%s2741_s11 + $0xd0] sm:$0x3]  ;;  %v309_v45 = vld [vmem:[%s2741_s11 + $0xc0] sm:$0xff] }
  0x24   : > { %4735 = vst [vmem:[#allocation9_spill] sm:$0xff] %v2837_v58  ;;  %v2843_v60 = vadd.f32 %v2752_v2, %v354_v52  ;;  %v361_v61 = vmul.f32 %v2747_v1, %v301_v48  ;;  %v2851_v63 = vsel %vm507_vm1, %v518_v53, %v519_v35  ;;  %v524_v0 = vrot.slane %v2828_v51, 1 }
  0x25   : > { %4736 = vst [vmem:[#allocation10_spill] sm:$0xff] %v2851_v63  ;;  %v2855_v3 = vadd.f32 %v2752_v2, %v358_v54  ;;  %v2858_v4 = vadd.f32 %v2752_v2, %v359_v55  ;;  %v526_v5 = vrot.slane %v2840_v59, 1  ;;  %v2863_v7 = vadd.f32 %v2752_v2, %v357_v56 }
  0x26   : > { %701 = vrot.lane.b32.xlu1 %v2819_v46, %s2671_s16  ;;  %v523_v6 = vrot.slane %v2843_v60, 1  ;;  %v362_v8 = vmul.f32 %v2747_v1, %v302_v57  ;;  %v360_v9 = vmul.f32 %v2747_v1, %v300_v62  ;;  %v2873_v16 = vadd.f32 %v2752_v2, %v361_v61  ;;  %v330_v46 = vld [vmem:[%s2741_s11 + $0x168] sm:$0xff] }
  0x27   : > { %697 = vrot.lane.b32.xlu0 %v512_v49, %s2671_s16  ;;  %4737 = vst [vmem:[#allocation11_spill] sm:$0xff] %v2855_v3  ;;  %v529_v13 = vrot.slane %v2855_v3, 1  ;;  %v531_v15 = vrot.slane %v2858_v4, 1  ;;  %v2883_v18 = vsel %vm507_vm1, %v524_v0, %v526_v5  ;;  %v528_v22 = vrot.slane %v2863_v7, 1 }
  0x28   : > { %4738 = vst [vmem:[#allocation12_spill] sm:$0xff] %v2873_v16  ;;  %v2876_v17 = vadd.f32 %v2752_v2, %v362_v8  ;;  %4739 = vst [vmem:[#allocation13_spill] sm:$0xff] %v2883_v18  ;;  %v2887_v23 = vadd.f32 %v2752_v2, %v360_v9  ;;  %v2890_v24 = vsel %vm507_vm1, %v523_v6, %v524_v0  ;;  %v534_v36 = vrot.slane %v2873_v16, 1  ;;  %v313_v0 = vld [vmem:[%s2741_s11 + $0xe0] sm:$0xff] }
  0x29   : > { %4741 = vst [vmem:[#allocation15_spill] sm:$0xff] %v2890_v24  ;;  %v364_v28 = vmul.f32 %v2747_v1, %v304_v10  ;;  %v365_v29 = vmul.f32 %v2747_v1, %v305_v11  ;;  %v363_v30 = vmul.f32 %v2747_v1, %v303_v12  ;;  %v2899_v35 = vsel %vm507_vm1, %v529_v13, %v531_v15  ;;  %v314_v10 = vld [vmem:[%s2741_s11 + $0xe8] sm:$0x3]  ;;  %v312_v12 = vld [vmem:[%s2741_s11 + $0xd8] sm:$0xff] }
  0x2a   : > { %705 = vrot.lane.b32.xlu1 %v2837_v58, %s2671_s16  ;;  %4740 = vst [vmem:[#allocation14_spill] sm:$0xff] %v2887_v23  ;;  %4742 = vst [vmem:[#allocation16_spill] sm:$0xff] %v2899_v35  ;;  %v536_v37 = vrot.slane %v2876_v17, 1  ;;  %v2909_v40 = vsel %vm507_vm1, %v528_v22, %v529_v13  ;;  %v533_v41 = vrot.slane %v2887_v23, 1  ;;  %v367_v42 = vmul.f32 %v2747_v1, %v307_v31  ;;  %v316_v31 = vld [vmem:[%s2741_s11 + $0xf8] sm:$0xff] }
  0x2b   : > { %703 = vrot.lane.b32.xlu0 %v2851_v63, %s2671_s16  ;;  %4743 = vst [vmem:[#allocation17_spill] sm:$0xff] %v2909_v40  ;;  %v368_v43 = vmul.f32 %v2747_v1, %v308_v33  ;;  %v2917_v48 = vadd.f32 %v2752_v2, %v364_v28  ;;  %v2920_v49 = vadd.f32 %v2752_v2, %v365_v29  ;;  %v331_v63 = vld [vmem:[%s2741_s11 + $0x170] sm:$0xff]  ;;  %vm1836_vm3 = vcmask 1043456  }
  0x2c   : > { %v2923_v50 = vadd.f32 %v2752_v2, %v363_v30  ;;  %v366_v52 = vmul.f32 %v2747_v1, %v306_v34  ;;  %v370_v53 = vmul.f32 %v2747_v1, %v310_v38  ;;  %v2928_v54 = vsel %vm507_vm1, %v534_v36, %v536_v37  ;;  %v317_v38 = vld [vmem:[%s2741_s11 + $0x100] sm:$0x3] }
  0x2d   : > { %4744 = vst [vmem:[#allocation18_spill] sm:$0xff] %v2917_v48  ;;  %4746 = vst [vmem:[#allocation20_spill] sm:$0xff] %v2928_v54  ;;  %v371_v55 = vmul.f32 %v2747_v1, %v311_v44  ;;  %v369_v56 = vmul.f32 %v2747_v1, %v309_v45  ;;  %v2937_v57 = vsel %vm507_vm1, %v533_v41, %v534_v36  ;;  %v539_v5 = vrot.slane %v2917_v48, 1  ;;  %v315_v41 = vld [vmem:[%s2741_s11 + $0xf0] sm:$0xff] }
  0x2e   : > { %709 = vrot.lane.b32.xlu1 %v2883_v18, %s2671_s16  ;;  %4745 = vst [vmem:[#allocation19_spill] sm:$0xff] %v2923_v50  ;;  %4747 = vst [vmem:[#allocation21_spill] sm:$0xff] %v2937_v57  ;;  %v2940_v61 = vadd.f32 %v2752_v2, %v367_v42  ;;  %v2943_v62 = vadd.f32 %v2752_v2, %v368_v43  ;;  %v541_v6 = vrot.slane %v2920_v49, 1  ;;  %v538_v8 = vrot.slane %v2923_v50, 1 }
  0x2f   : > { %707 = vrot.lane.b32.xlu0 %v2890_v24, %s2671_s16  ;;  %v2950_v9 = vadd.f32 %v2752_v2, %v366_v52  ;;  %v2954_v11 = vadd.f32 %v2752_v2, %v370_v53  ;;  %v2958_v13 = vadd.f32 %v2752_v2, %v371_v55  ;;  %v2961_v15 = vadd.f32 %v2752_v2, %v369_v56 }
  0x30   : > { %4748 = vst [vmem:[#allocation22_spill] sm:$0xff] %v2940_v61  ;;  %v373_v22 = vmul.f32 %v2747_v1, %v313_v0  ;;  %v544_v28 = vrot.slane %v2940_v61, 1  ;;  %v546_v29 = vrot.slane %v2943_v62, 1  ;;  %v374_v30 = vmul.f32 %v2747_v1, %v314_v10  ;;  %v320_v10 = vld [vmem:[%s2741_s11 + $0x118] sm:$0x3] }
  0x31   : > { %4749 = vst [vmem:[#allocation23_spill] sm:$0xff] %v2950_v9  ;;  %v2973_v33 = vsel %vm507_vm1, %v539_v5, %v541_v6  ;;  %v2976_v34 = vsel %vm507_vm1, %v538_v8, %v539_v5  ;;  %v543_v36 = vrot.slane %v2950_v9, 1  ;;  %v372_v37 = vmul.f32 %v2747_v1, %v312_v12  ;;  %v319_v8 = vld [vmem:[%s2741_s11 + $0x110] sm:$0xff]  ;;  %v318_v12 = vld [vmem:[%s2741_s11 + $0x108] sm:$0xff] }
  0x32   : > { %713 = vrot.lane.b32.xlu1 %v2899_v35, %s2671_s16  ;;  %4750 = vst [vmem:[#allocation24_spill] sm:$0xff] %v2973_v33  ;;  %4751 = vst [vmem:[#allocation25_spill] sm:$0xff] %v2976_v34  ;;  %v549_v42 = vrot.slane %v2954_v11, 1  ;;  %v551_v43 = vrot.slane %v2958_v13, 1  ;;  %v548_v44 = vrot.slane %v2961_v15, 1  ;;  %v2986_v45 = vadd.f32 %v2752_v2, %v373_v22  ;;  %v327_v35 = vld [vmem:[%s2741_s11 + $0x150] sm:$0xff] }
  0x33   : > { %711 = vrot.lane.b32.xlu0 %v2909_v40, %s2671_s16  ;;  %v376_v52 = vmul.f32 %v2747_v1, %v316_v31  ;;  %v2994_v53 = vadd.f32 %v2752_v2, %v374_v30  ;;  %v377_v55 = vmul.f32 %v2747_v1, %v317_v38  ;;  %v375_v56 = vmul.f32 %v2747_v1, %v315_v41  ;;  %v322_v31 = vld [vmem:[%s2741_s11 + $0x128] sm:$0xff]  ;;  %v323_v41 = vld [vmem:[%s2741_s11 + $0x130] sm:$0x3] }
  0x34   : > { %v2999_v0 = vsel %vm507_vm1, %v544_v28, %v546_v29  ;;  %v3002_v5 = vsel %vm507_vm1, %v543_v36, %v544_v28  ;;  %v3005_v6 = vadd.f32 %v2752_v2, %v372_v37  ;;  %v3011_v22 = vsel %vm507_vm1, %v549_v42, %v551_v43 }
  0x35   : > { %4752 = vst [vmem:[#allocation26_spill] sm:$0xff] %v2999_v0  ;;  %4753 = vst [vmem:[#allocation27_spill] sm:$0xff] %v3002_v5  ;;  %v3014_v30 = vsel %vm507_vm1, %v548_v44, %v549_v42  ;;  %v554_v29 = vrot.slane %v2986_v45, 1  ;;  %v556_v28 = vrot.slane %v2994_v53, 1  ;;  %v3024_v36 = vadd.f32 %v2752_v2, %v376_v52  ;;  %v321_v42 = vld [vmem:[%s2741_s11 + $0x120] sm:$0xff] }
  0x36   : > { %717 = vrot.lane.b32.xlu1 %v2928_v54, %s2671_s16  ;;  %4754 = vst [vmem:[#allocation28_spill] sm:$0xff] %v3011_v22  ;;  %4755 = vst [vmem:[#allocation29_spill] sm:$0xff] %v3014_v30  ;;  %v3027_v37 = vadd.f32 %v2752_v2, %v377_v55  ;;  %v3030_v38 = vadd.f32 %v2752_v2, %v375_v56  ;;  %v553_v43 = vrot.slane %v3005_v6, 1  ;;  %v324_v54 = vld [vmem:[%s2741_s11 + $0x138] sm:$0xff]  ;;  %vm1463_vm4 = vcmask 31744  }
  0x37   : > { %715 = vrot.lane.b32.xlu0 %v2937_v57, %s2671_s16  ;;  %4756 = vst [vmem:[#allocation30_spill] sm:$0xff] %v3024_v36  ;;  %v379_v44 = vmul.f32 %v2747_v1, %v319_v8  ;;  %v382_v52 = vmul.f32 %v2747_v1, %v322_v31  ;;  %v383_v55 = vmul.f32 %v2747_v1, %v323_v41  ;;  %v559_v8 = vrot.slane %v3024_v36, 1  ;;  %v325_v31 = vld [vmem:[%s2741_s11 + $0x140] sm:$0xff]  ;;  %v326_v41 = vld [vmem:[%s2741_s11 + $0x148] sm:$0x3] }
  0x38   : > { %v381_v56 = vmul.f32 %v2747_v1, %v321_v42  ;;  %v3054_v42 = vsel %vm507_vm1, %v553_v43, %v554_v29  ;;  %v385_v43 = vmul.f32 %v2747_v1, %v325_v31  ;;  %v387_v24 = vmul.f32 %v2747_v1, %v327_v35 }
  0x39   : > { %4758 = vst [vmem:[#allocation32_spill] sm:$0xff] %v3054_v42  ;;  %v3070_v57 = vadd.f32 %v2752_v2, %v383_v55  ;;  %vm1496_vm5 = vcmask 64512   ;;  %vm1529_vm6 = vcmask 97280   ;;  %vm1562_vm7 = vcmask 130048  }
  0x3a   : > { %721 = vrot.lane.b32.xlu1 %v2973_v33, %s2671_s16  ;;  %v3046_v33 = vsel %vm507_vm1, %v554_v29, %v556_v28  ;;  %v3073_v29 = vadd.f32 %v2752_v2, %v381_v56  ;;  %vm1595_vm8 = vcmask 162816   ;;  %vm1628_vm9 = vcmask 195584  }
  0x3b   : > { %719 = vrot.lane.b32.xlu0 %v2976_v34, %s2671_s16  ;;  %4757 = vst [vmem:[#allocation31_spill] sm:$0xff] %v3046_v33  ;;  %v3066_v34 = vadd.f32 %v2752_v2, %v382_v52  ;;  %v328_v52 = vld [vmem:[%s2741_s11 + $0x158] sm:$0xff]  ;;  %vm1661_vm10 = vcmask 228352   ;;  %vm1694_vm11 = vcmask 261120   ;;  %vm1739_vm12 = vcmask 293888  }
  0x3c   : > { %4761 = vst [vmem:[#allocation35_spill] sm:$0xff] %v3073_v29  ;;  %vm2200_vm13 = vcmask 57344  }
  0x3d   : > { %4760 = vst [vmem:[#allocation34_spill] sm:$0xff] %v3066_v34 }
  0x3e   : > { %725 = vrot.lane.b32.xlu1 %v2999_v0, %s2671_s16  ;;  %v380_v0 = vmul.f32 %v2747_v1, %v320_v10  ;;  %v561_v10 = vrot.slane %v3027_v37, 1 }
  0x3f   : > { %723 = vrot.lane.b32.xlu0 %v3002_v5, %s2671_s16  ;;  %v378_v5 = vmul.f32 %v2747_v1, %v318_v12  ;;  %v558_v12 = vrot.slane %v3030_v38, 1 }
  0x41   : > { %v3063_v28 = vadd.f32 %v2752_v2, %v378_v5  ;;  %v3082_v5 = vsel %vm507_vm1, %v559_v8, %v561_v10  ;;  %v569_v10 = vrot.slane %v3066_v34, 1 }
  0x42   : > { %729 = vrot.lane.b32.xlu1 %v3011_v22, %s2671_s16  ;;  %v3057_v22 = vadd.f32 %v2752_v2, %v379_v44  ;;  %4762 = vst [vmem:[#allocation36_spill] sm:$0xff] %v3082_v5  ;;  %v3085_v44 = vsel %vm507_vm1, %v558_v12, %v559_v8  ;;  %v568_v8 = vrot.slane %v3073_v29, 1  ;;  %v3098_v12 = vadd.f32 %v2752_v2, %v385_v43 }
  0x43   : > { %727 = vrot.lane.b32.xlu0 %v3014_v30, %s2671_s16  ;;  %v3060_v30 = vadd.f32 %v2752_v2, %v380_v0  ;;  %v386_v0 = vmul.f32 %v2747_v1, %v326_v41  ;;  %4763 = vst [vmem:[#allocation37_spill] sm:$0xff] %v3085_v44  ;;  %v563_v31 = vrot.slane %v3063_v28, 1  ;;  %v384_v41 = vmul.f32 %v2747_v1, %v324_v54 }
  0x44   : > { %4759 = vst [vmem:[#allocation33_spill] sm:$0xff] %v3057_v22  ;;  %v564_v55 = vrot.slane %v3057_v22, 1  ;;  %4764 = vst [vmem:[#allocation38_spill] sm:$0xff] %v3098_v12  ;;  %v388_v54 = vmul.f32 %v2747_v1, %v328_v52  ;;  %v3126_v52 = vsel %vm507_vm1, %v568_v8, %v569_v10  ;;  %v574_v35 = vrot.slane %v3098_v12, 1 }
  0x45   : > { %v566_v56 = vrot.slane %v3060_v30, 1  ;;  %v3101_v40 = vadd.f32 %v2752_v2, %v386_v0  ;;  %v3117_v0 = vadd.f32 %v2752_v2, %v384_v41  ;;  %4769 = vst [vmem:[#allocation43_spill] sm:$0xff] %v3126_v52  ;;  %v391_v41 = vmul.f32 %v2747_v1, %v331_v63 }
  0x46   : > { %733 = vrot.lane.b32.xlu1 %v3046_v33, %s2671_s16  ;;  %v329_v33 = vld [vmem:[%s2741_s11 + $0x160] sm:$0x3]  ;;  %v3114_v43 = vsel %vm507_vm1, %v563_v31, %v564_v55  ;;  %v390_v8 = vmul.f32 %v2747_v1, %v330_v46 }
  0x47   : > { %731 = vrot.lane.b32.xlu0 %v3054_v42, %s2671_s16  ;;  %v571_v42 = vrot.slane %v3070_v57, 1  ;;  %v389_v18 = vmul.f32 %v2747_v1, %v329_v33  ;;  %v3111_v58 = vsel %vm507_vm1, %v564_v55, %v566_v56  ;;  %4766 = vst [vmem:[#allocation40_spill] sm:$0xff] %v3114_v43  ;;  %4767 = vst [vmem:[#allocation41_spill] sm:$0xff] %v3117_v0  ;;  %v576_v33 = vrot.slane %v3101_v40, 1 }
  0x48   : > { %4765 = vst [vmem:[#allocation39_spill] sm:$0xff] %v3111_v58  ;;  %v3135_v55 = vadd.f32 %v2752_v2, %v388_v54  ;;  %v573_v31 = vrot.slane %v3117_v0, 1 }
  0x49   : > { %v3138_v56 = vadd.f32 %v2752_v2, %v389_v18  ;;  %v3152_v18 = vsel %vm507_vm1, %v574_v35, %v576_v33 }
  0x4a   : > { %737 = vrot.lane.b32.xlu1 %v3082_v5, %s2671_s16  ;;  %v332_v5 = vld [vmem:[%s2741_s11 + $0x178] sm:$0x3]  ;;  %4770 = vst [vmem:[#allocation44_spill] sm:$0xff] %v3135_v55  ;;  %4772 = vst [vmem:[#allocation46_spill] sm:$0xff] %v3152_v18  ;;  %v3158_v63 = vsel %vm507_vm1, %v573_v31, %v574_v35 }
  0x4b   : > { %735 = vrot.lane.b32.xlu0 %v3085_v44, %s2671_s16  ;;  %v3123_v44 = vsel %vm507_vm1, %v569_v10, %v571_v42  ;;  %v3141_v42 = vadd.f32 %v2752_v2, %v387_v24  ;;  %v392_v10 = vmul.f32 %v2747_v1, %v332_v5  ;;  %v579_v24 = vrot.slane %v3135_v55, 1  ;;  %4773 = vst [vmem:[#allocation47_spill] sm:$0xff] %v3158_v63 }
  0x4c   : > { %4768 = vst [vmem:[#allocation42_spill] sm:$0xff] %v3123_v44  ;;  %v581_v54 = vrot.slane %v3138_v56, 1  ;;  %v3161_v1 = vadd.f32 %v2752_v2, %v391_v41  ;;  %v3167_v5 = vadd.f32 %v2752_v2, %v390_v8 }
  0x4d   : > { %4771 = vst [vmem:[#allocation45_spill] sm:$0xff] %v3141_v42  ;;  %v3164_v46 = vadd.f32 %v2752_v2, %v392_v10  ;;  %v590_v2 = vrot.slane %v2779_v21, 2 }
  0x4e   : > { %741 = vrot.lane.b32.xlu1 %v3111_v58, %s2671_s16  ;;  %v578_v58 = vrot.slane %v3141_v42, 1  ;;  %4774 = vst [vmem:[#allocation48_spill] sm:$0xff] %v3161_v1  ;;  %4775 = vst [vmem:[#allocation49_spill] sm:$0xff] %v3167_v5  ;;  %v3174_v33 = vsel %vm507_vm1, %v579_v24, %v581_v54  ;;  %v584_v31 = vrot.slane %v3161_v1, 1  ;;  %v583_v10 = vrot.slane %v3167_v5, 1 }
  0x4f   : > { %739 = vrot.lane.b32.xlu0 %v3114_v43, %s2671_s16  ;;  %4776 = vst [vmem:[#allocation50_spill] sm:$0xff] %v3174_v33  ;;  %v586_v41 = vrot.slane %v3164_v46, 1  ;;  %v589_v54 = vrot.slane %v2776_v20, 2 }
  0x50   : > { %v3177_v35 = vsel %vm507_vm1, %v578_v58, %v579_v24  ;;  %v3191_v58 = vsel %vm507_vm1, %v583_v10, %v584_v31  ;;  %v592_v24 = vrot.slane %v2788_v26, 2  ;;  %v594_v10 = vrot.slane %v2766_v14, 2 }
  0x51   : > { %4777 = vst [vmem:[#allocation51_spill] sm:$0xff] %v3177_v35  ;;  %v3188_v8 = vsel %vm507_vm1, %v584_v31, %v586_v41  ;;  %4779 = vst [vmem:[#allocation53_spill] sm:$0xff] %v3191_v58  ;;  %v591_v31 = vsel %vm588_vm2, %v589_v54, %v590_v2  ;;  %v607_v54 = vrot.slane %v2840_v59, 2  ;;  %v609_v59 = vrot.slane %v2863_v7, 2 }
  0x52   : > { %745 = vrot.lane.b32.xlu1 %v3123_v44, %s2671_s16  ;;  %4778 = vst [vmem:[#allocation52_spill] sm:$0xff] %v3188_v8  ;;  %v593_v41 = vsel %vm588_vm2, %v590_v2, %v592_v24  ;;  %v599_v24 = vrot.slane %v2822_v47, 2  ;;  %v605_v2 = vrot.slane %v2828_v51, 2 }
  0x53   : > { %743 = vrot.lane.b32.xlu0 %v3126_v52, %s2671_s16 }
  0x56   : > { %749 = vrot.lane.b32.xlu1 %v3152_v18, %s2671_s16 }
  0x57   : > { %747 = vrot.lane.b32.xlu0 %v3158_v63, %s2671_s16 }
  0x5a   : > { %753 = vrot.lane.b32.xlu1 %v3174_v33, %s2671_s16  ;;  %v595_v33 = vrot.slane %v2773_v19, 2 }
  0x5b   : > { %751 = vrot.lane.b32.xlu0 %v3177_v35, %s2671_s16  ;;  %v597_v35 = vrot.slane %v2785_v25, 2  ;;  %v602_v25 = vrot.slane %v2798_v32, 2  ;;  %v604_v32 = vrot.slane %v2843_v60, 2 }
  0x5d   : > { %v3207_v26 = vsel %vm588_vm2, %v595_v33, %v597_v35 }
  0x5e   : > { %757 = vrot.lane.b32.xlu1 %v3188_v8, %s2671_s16  ;;  %v3210_v8 = vsel %vm588_vm2, %v594_v10, %v595_v33  ;;  %v3237_v10 = vsel %vm588_vm2, %v604_v32, %v605_v2  ;;  %v620_v32 = vrot.slane %v2917_v48, 2 }
  0x5f   : > { %755 = vrot.lane.b32.xlu0 %v3191_v58, %s2671_s16  ;;  %v600_v58 = vrot.slane %v2791_v27, 2 }
  0x61   : > { %v3221_v35 = vsel %vm588_vm2, %v600_v58, %v602_v25  ;;  %v3224_v33 = vsel %vm588_vm2, %v599_v24, %v600_v58  ;;  %v612_v58 = vrot.slane %v2858_v4, 2  ;;  %v615_v25 = vrot.slane %v2873_v16, 2 }
  0x62   : > { %793 = vrot.lane.b32.xlu1 %v593_v41, %s2672_s17  ;;  %v610_v41 = vrot.slane %v2855_v3, 2  ;;  %v614_v4 = vrot.slane %v2887_v23, 2 }
  0x63   : > { %791 = vrot.lane.b32.xlu0 %v591_v31, %s2672_s17  ;;  %v3234_v31 = vsel %vm588_vm2, %v605_v2, %v607_v54  ;;  %v617_v2 = vrot.slane %v2876_v17, 2  ;;  %v619_v17 = vrot.slane %v2923_v50, 2 }
  0x64   : > { %v3247_v24 = vsel %vm588_vm2, %v610_v41, %v612_v58  ;;  %v3250_v54 = vsel %vm588_vm2, %v609_v59, %v610_v41  ;;  %v3263_v58 = vsel %vm588_vm2, %v614_v4, %v615_v25  ;;  %v622_v41 = vrot.slane %v2920_v49, 2 }
  0x65   : > { %v3260_v18 = vsel %vm588_vm2, %v615_v25, %v617_v2  ;;  %v625_v59 = vrot.slane %v2940_v61, 2  ;;  %v3276_v2 = vsel %vm588_vm2, %v619_v17, %v620_v32  ;;  %v627_v25 = vrot.slane %v2943_v62, 2 }
  0x66   : > { %797 = vrot.lane.b32.xlu1 %v3207_v26, %s2672_s17  ;;  %v3273_v63 = vsel %vm588_vm2, %v620_v32, %v622_v41  ;;  %v624_v49 = vrot.slane %v2950_v9, 2  ;;  %v630_v4 = vrot.slane %v2954_v11, 2  ;;  %v632_v32 = vrot.slane %v2958_v13, 2 }
  0x67   : > { %795 = vrot.lane.b32.xlu0 %v3210_v8, %s2672_s17  ;;  %v3286_v44 = vsel %vm588_vm2, %v625_v59, %v627_v25  ;;  %v629_v62 = vrot.slane %v2961_v15, 2  ;;  %v635_v17 = vrot.slane %v2986_v45, 2  ;;  %v634_v13 = vrot.slane %v3005_v6, 2 }
  0x68   : > { %v3289_v41 = vsel %vm588_vm2, %v624_v49, %v625_v59  ;;  %v3299_v52 = vsel %vm588_vm2, %v630_v4, %v632_v32  ;;  %v637_v59 = vrot.slane %v2994_v53, 2  ;;  %v640_v49 = vrot.slane %v3024_v36, 2 }
  0x69   : > { %v3302_v25 = vsel %vm588_vm2, %v629_v62, %v630_v4  ;;  %v3315_v32 = vsel %vm588_vm2, %v634_v13, %v635_v17  ;;  %v642_v4 = vrot.slane %v3027_v37, 2  ;;  %v639_v53 = vrot.slane %v3030_v38, 2 }
  0x6a   : > { %801 = vrot.lane.b32.xlu1 %v3221_v35, %s2672_s17  ;;  %v3312_v43 = vsel %vm588_vm2, %v635_v17, %v637_v59  ;;  %v645_v62 = vrot.slane %v3057_v22, 2  ;;  %v647_v17 = vrot.slane %v3060_v30, 2  ;;  %v644_v37 = vrot.slane %v3063_v28, 2 }
  0x6b   : > { %799 = vrot.lane.b32.xlu0 %v3224_v33, %s2672_s17  ;;  %v3325_v36 = vsel %vm588_vm2, %v640_v49, %v642_v4  ;;  %v3328_v59 = vsel %vm588_vm2, %v639_v53, %v640_v49  ;;  %v650_v13 = vrot.slane %v3066_v34, 2  ;;  %v652_v49 = vrot.slane %v3070_v57, 2 }
  0x6c   : > { %v3338_v22 = vsel %vm588_vm2, %v645_v62, %v647_v17  ;;  %v3341_v4 = vsel %vm588_vm2, %v644_v37, %v645_v62  ;;  %v649_v30 = vrot.slane %v3073_v29, 2  ;;  %v655_v53 = vrot.slane %v3098_v12, 2  ;;  %v4821_v29 = vld [vmem:[#allocation17_spill] sm:$0xff] }
  0x6d   : > { %4780 = vst [vmem:[#allocation54_spill] sm:$0xff] %v3338_v22  ;;  %4781 = vst [vmem:[#allocation55_spill] sm:$0xff] %v3341_v4  ;;  %v3351_v34 = vsel %vm588_vm2, %v650_v13, %v652_v49  ;;  %v657_v62 = vrot.slane %v3101_v40, 2  ;;  %v654_v57 = vrot.slane %v3117_v0, 2  ;;  %v660_v37 = vrot.slane %v3135_v55, 2 }
  0x6e   : > { %805 = vrot.lane.b32.xlu1 %v3234_v31, %s2672_s17  ;;  %4782 = vst [vmem:[#allocation56_spill] sm:$0xff] %v3351_v34  ;;  %v3354_v17 = vsel %vm588_vm2, %v649_v30, %v650_v13  ;;  %v662_v13 = vrot.slane %v3138_v56, 2  ;;  %v659_v40 = vrot.slane %v3141_v42, 2  ;;  %v667_v56 = vrot.slane %v3164_v46, 2 }
  0x6f   : > { %803 = vrot.lane.b32.xlu0 %v3237_v10, %s2672_s17  ;;  %4783 = vst [vmem:[#allocation57_spill] sm:$0xff] %v3354_v17  ;;  %v3364_v12 = vsel %vm588_vm2, %v655_v53, %v657_v62  ;;  %v3367_v49 = vsel %vm588_vm2, %v654_v57, %v655_v53  ;;  %v665_v62 = vrot.slane %v3161_v1, 2  ;;  %v664_v57 = vrot.slane %v3167_v5, 2 }
  0x70   : > { %4784 = vst [vmem:[#allocation58_spill] sm:$0xff] %v3364_v12  ;;  %4785 = vst [vmem:[#allocation59_spill] sm:$0xff] %v3367_v49  ;;  %v3381_v55 = vsel %vm588_vm2, %v660_v37, %v662_v13  ;;  %v3384_v53 = vsel %vm588_vm2, %v659_v40, %v660_v37 }
  0x71   : > { %4786 = vst [vmem:[#allocation60_spill] sm:$0xff] %v3381_v55  ;;  %4787 = vst [vmem:[#allocation61_spill] sm:$0xff] %v3384_v53  ;;  %v3397_v13 = vsel %vm588_vm2, %v665_v62, %v667_v56  ;;  %v3400_v37 = vsel %vm588_vm2, %v664_v57, %v665_v62 }
  0x72   : > { %809 = vrot.lane.b32.xlu1 %v3247_v24, %s2672_s17  ;;  %4788 = vst [vmem:[#allocation62_spill] sm:$0xff] %v3397_v13  ;;  %4789 = vst [vmem:[#allocation63_spill] sm:$0xff] %v3400_v37 }
  0x73   : > { %807 = vrot.lane.b32.xlu0 %v3250_v54, %s2672_s17 }
  0x76   : > { %813 = vrot.lane.b32.xlu1 %v3260_v18, %s2672_s17 }
  0x77   : > { %811 = vrot.lane.b32.xlu0 %v3263_v58, %s2672_s17 }
  0x7a   : > { %817 = vrot.lane.b32.xlu1 %v3273_v63, %s2672_s17 }
  0x7b   : > { %815 = vrot.lane.b32.xlu0 %v3276_v2, %s2672_s17 }
  0x7e   : > { %821 = vrot.lane.b32.xlu1 %v3286_v44, %s2672_s17 }
  0x7f   : > { %819 = vrot.lane.b32.xlu0 %v3289_v41, %s2672_s17 }
  0x82   : > { %825 = vrot.lane.b32.xlu1 %v3299_v52, %s2672_s17 }
  0x83   : > { %823 = vrot.lane.b32.xlu0 %v3302_v25, %s2672_s17 }
  0x86   : > { %829 = vrot.lane.b32.xlu1 %v3312_v43, %s2672_s17 }
  0x87   : > { %827 = vrot.lane.b32.xlu0 %v3315_v32, %s2672_s17 }
  0x8a   : > { %833 = vrot.lane.b32.xlu1 %v3325_v36, %s2672_s17 }
  0x8b   : > { %831 = vrot.lane.b32.xlu0 %v3328_v59, %s2672_s17 }
  0x8e   : > { %837 = vrot.lane.b32.xlu1 %v3338_v22, %s2672_s17  ;;  %v4824_v22 = vld [vmem:[#allocation16_spill] sm:$0xff] }
  0x8f   : > { %835 = vrot.lane.b32.xlu0 %v3341_v4, %s2672_s17 }
  0x92   : > { %841 = vrot.lane.b32.xlu1 %v3351_v34, %s2672_s17 }
  0x93   : > { %839 = vrot.lane.b32.xlu0 %v3354_v17, %s2672_s17 }
  0x94   : > { %v3371_v30 = vpop.permute.xlu1 %699 }
  0x95   : > { %v3373_v0 = vpop.permute.xlu0 %695 }
  0x96   : > { %845 = vrot.lane.b32.xlu1 %v3364_v12, %s2672_s17 }
  0x97   : > { %843 = vrot.lane.b32.xlu0 %v3367_v49, %s2672_s17 }
  0x98   : > { %v3388_v42 = vpop.permute.xlu1 %701 }
  0x99   : > { %v3390_v34 = vpop.permute.xlu0 %697 }
  0x9a   : > { %849 = vrot.lane.b32.xlu1 %v3381_v55, %s2672_s17 }
  0x9b   : > { %847 = vrot.lane.b32.xlu0 %v3384_v53, %s2672_s17 }
  0x9c   : > { %v3402_v40 = vpop.permute.xlu1 %705 }
  0x9d   : > { %v3404_v46 = vpop.permute.xlu0 %703 }
  0x9e   : > { %853 = vrot.lane.b32.xlu1 %v3397_v13, %s2672_s17 }
  0x9f   : > { %851 = vrot.lane.b32.xlu0 %v3400_v37, %s2672_s17 }
  0xa0   : > { %v3410_v1 = vpop.permute.xlu1 %709 }
  0xa1   : > { %v3412_v5 = vpop.permute.xlu0 %707 }
  0xa2   : > { %889 = vrot.lane.b32.xlu1 %v2773_v19, %s2673_s18 }
  0xa3   : > { %887 = vrot.lane.b32.xlu0 %v2766_v14, %s2673_s18 }
  0xa4   : > { %v3418_v62 = vpop.permute.xlu1 %713 }
  0xa5   : > { %4790 = vst [vmem:[#allocation64_spill] sm:$0xff] %v3418_v62  ;;  %v3420_v56 = vpop.permute.xlu0 %711 }
  0xa6   : > { %893 = vrot.lane.b32.xlu1 %v2791_v27, %s2673_s18 }
  0xa7   : > { %891 = vrot.lane.b32.xlu0 %v2822_v47, %s2673_s18 }
  0xa8   : > { %v3426_v57 = vpop.permute.xlu1 %717 }
  0xa9   : > { %4791 = vst [vmem:[#allocation65_spill] sm:$0xff] %v3426_v57  ;;  %v3428_v13 = vpop.permute.xlu0 %715  ;;  %v1730_v57 = vld [vmem:[%s4623_s1 + $0x18] sm:$0xff] }
  0xaa   : > { %4792 = vst [vmem:[#allocation66_spill] sm:$0xff] %v3428_v13  ;;  %897 = vrot.lane.b32.xlu1 %v2828_v51, %s2673_s18 }
  0xab   : > { %895 = vrot.lane.b32.xlu0 %v2843_v60, %s2673_s18 }
  0xac   : > { %v3434_v37 = vpop.permute.xlu1 %721 }
  0xad   : > { %4793 = vst [vmem:[#allocation67_spill] sm:$0xff] %v3434_v37  ;;  %v3436_v55 = vpop.permute.xlu0 %719 }
  0xae   : > { %4794 = vst [vmem:[#allocation68_spill] sm:$0xff] %v3436_v55  ;;  %901 = vrot.lane.b32.xlu1 %v2855_v3, %s2673_s18  ;;  %v1727_v55 = vld [vmem:[%s4623_s1] sm:$0xff] }
  0xaf   : > { %899 = vrot.lane.b32.xlu0 %v2863_v7, %s2673_s18 }
  0xb0   : > { %v3442_v53 = vpop.permute.xlu1 %725 }
  0xb1   : > { %4795 = vst [vmem:[#allocation69_spill] sm:$0xff] %v3442_v53  ;;  %v3444_v12 = vpop.permute.xlu0 %723  ;;  %v1728_v53 = vld [vmem:[%s4623_s1 + $0x8] sm:$0xff] }
  0xb2   : > { %4796 = vst [vmem:[#allocation70_spill] sm:$0xff] %v3444_v12  ;;  %905 = vrot.lane.b32.xlu1 %v2873_v16, %s2673_s18  ;;  %v2554_v12 = vpack.c.bf16 %v1728_v53, %v1727_v55 }
  0xb3   : > { %903 = vrot.lane.b32.xlu0 %v2887_v23, %s2673_s18 }
  0xb4   : > { %v3450_v49 = vpop.permute.xlu1 %729  ;;  %2555 = vmatprep.subr.bf16.mxu0 %v2554_v12  ;;  %2562 = vmatprep.subr.bf16.mxu1 %v2554_v12 }
  0xb5   : > { %4797 = vst [vmem:[#allocation71_spill] sm:$0xff] %v3450_v49  ;;  %v3452_v37 = vpop.permute.xlu0 %727  ;;  %2557 = vmatpush3.bf16.msra.mxu0 %v2554_v12  ;;  %2565 = vmatpush3.bf16.msra.mxu1 %v2554_v12  ;;  %v1731_v12 = vld [vmem:[%s4623_s1 + $0x20] sm:$0xf] }
  0xb6   : > { %4798 = vst [vmem:[#allocation72_spill] sm:$0xff] %v3452_v37  ;;  %983 = vrot.lane.b32.xlu1 %v2807_v39, %s2674_s23  ;;  %v1729_v37 = vld [vmem:[%s4623_s1 + $0x10] sm:$0xff]  ;;  %v4801_v39 = vld [vmem:[#allocation8_spill] sm:$0xff] }
  0xb7   : > { %907 = vrot.lane.b32.xlu0 %v2923_v50, %s2673_s18  ;;  %v2558_v55 = vpack.c.bf16 %v1730_v57, %v1729_v37  ;;  %v4806_v57 = vld [vmem:[#allocation10_spill] sm:$0xff] }
  0xb8   : > { %v3464_v17 = vpop.permute.xlu1 %733 }
  0xb9   : > { %4799 = vst [vmem:[#allocation73_spill] sm:$0xff] %v3464_v17  ;;  %v3466_v49 = vpop.permute.xlu0 %731  ;;  %2559 = vmatprep.subr.bf16.mxu0 %v2558_v55  ;;  %2563 = vmatprep.subr.bf16.mxu1 %v2558_v55 }
  0xba   : > { %4800 = vst [vmem:[#allocation74_spill] sm:$0xff] %v3466_v49  ;;  %1079 = vrot.lane.b32.xlu1 %v3210_v8, %s2675_s30  ;;  %2561 = vmatpush3.bf16.msra.mxu0 %v2558_v55 }
  0xbb   : > { %985 = vrot.lane.b32.xlu0 %v4801_v39, %s2674_s23  ;;  %2566 = vmatpush3.bf16.msra.mxu1 %v2558_v55  ;;  %v4809_v55 = vld [vmem:[#allocation9_spill] sm:$0xff] }
  0xbc   : > { %v3478_v53 = vpop.permute.xlu1 %737  ;;  %2504 = vmatprep.subr.msk.mxu0 %vm1836_vm3, %v1731_v12  ;;  %2564 = vmatprep.subr.msk.mxu1 %vm1836_vm3, %v1731_v12 }
  0xbd   : > { %4802 = vst [vmem:[#allocation8_spill] sm:$0xff] %v3478_v53  ;;  %v3480_v17 = vpop.permute.xlu0 %735 }
  0xbe   : > { %4803 = vst [vmem:[#allocation75_spill] sm:$0xff] %v3480_v17  ;;  %1175 = vrot.lane.b32.xlu1 %v2822_v47, %s2676_s9  ;;  %2505 = vmatpush3.msk.msra.mxu0 %vm1836_vm3, %v1731_v12 }
  0xbf   : > { %1081 = vrot.lane.b32.xlu0 %v3207_v26, %s2675_s30  ;;  %2567 = vmatpush3.msk.msra.mxu1 %vm1836_vm3, %v1731_v12 }
  0xc0   : > { %v3489_v8 = vpop.permute.xlu1 %741 }
  0xc1   : > { %4804 = vst [vmem:[#allocation76_spill] sm:$0xff] %v3489_v8  ;;  %v3491_v37 = vpop.permute.xlu0 %739 }
  0xc2   : > { %4805 = vst [vmem:[#allocation77_spill] sm:$0xff] %v3491_v37  ;;  %1271 = vrot.lane.b32.xlu1 %v4806_v57, %s2677_s13 }
  0xc3   : > { %1177 = vrot.lane.b32.xlu0 %v2791_v27, %s2676_s9 }
  0xc4   : > { %v3497_v26 = vpop.permute.xlu1 %745 }
  0xc5   : > { %4807 = vst [vmem:[#allocation10_spill] sm:$0xff] %v3497_v26  ;;  %v3499_v39 = vpop.permute.xlu0 %743 }
  0xc6   : > { %4808 = vst [vmem:[#allocation78_spill] sm:$0xff] %v3499_v39  ;;  %1273 = vrot.lane.b32.xlu1 %v4809_v55, %s2677_s13 }
  0xc7   : > { %987 = vrot.lane.b32.xlu0 %v4806_v57, %s2674_s23 }
  0xc8   : > { %v3505_v8 = vpop.permute.xlu1 %749 }
  0xc9   : > { %4810 = vst [vmem:[#allocation9_spill] sm:$0xff] %v3505_v8  ;;  %v3507_v12 = vpop.permute.xlu0 %747 }
  0xca   : > { %4811 = vst [vmem:[#allocation79_spill] sm:$0xff] %v3507_v12  ;;  %989 = vrot.lane.b32.xlu1 %v4809_v55, %s2674_s23 }
  0xcb   : > { %1367 = vrot.lane.b32.xlu0 %v3224_v33, %s2678_s14 }
  0xcc   : > { %v3513_v26 = vpop.permute.xlu1 %753 }
  0xcd   : > { %4812 = vst [vmem:[#allocation80_spill] sm:$0xff] %v3513_v26  ;;  %v3515_v39 = vpop.permute.xlu0 %751 }
  0xce   : > { %4813 = vst [vmem:[#allocation81_spill] sm:$0xff] %v3515_v39  ;;  %1369 = vrot.lane.b32.xlu1 %v3221_v35, %s2678_s14  ;;  %v4816_v39 = vld [vmem:[#allocation15_spill] sm:$0xff] }
  0xcf   : > { %1083 = vrot.lane.b32.xlu0 %v3224_v33, %s2675_s30 }
  0xd0   : > { %v3521_v57 = vpop.permute.xlu1 %757 }
  0xd1   : > { %4814 = vst [vmem:[#allocation82_spill] sm:$0xff] %v3521_v57  ;;  %v3523_v8 = vpop.permute.xlu0 %755 }
  0xd2   : > { %4815 = vst [vmem:[#allocation83_spill] sm:$0xff] %v3523_v8  ;;  %1179 = vrot.lane.b32.xlu1 %v2843_v60, %s2676_s9  ;;  %v4817_v8 = vld [vmem:[#allocation13_spill] sm:$0xff] }
  0xd3   : > { %1085 = vrot.lane.b32.xlu0 %v3221_v35, %s2675_s30 }
  0xd4   : > { %v3529_v55 = vpop.permute.xlu1 %793 }
  0xd5   : > { %v3531_v26 = vpop.permute.xlu0 %791 }
  0xd6   : > { %1275 = vrot.lane.b32.xlu1 %v4816_v39, %s2677_s13 }
  0xd7   : > { %1181 = vrot.lane.b32.xlu0 %v2828_v51, %s2676_s9 }
  0xd8   : > { %v3537_v33 = vpop.permute.xlu1 %797 }
  0xd9   : > { %v3539_v57 = vpop.permute.xlu0 %795 }
  0xda   : > { %1277 = vrot.lane.b32.xlu1 %v4817_v8, %s2677_s13 }
  0xdb   : > { %991 = vrot.lane.b32.xlu0 %v4816_v39, %s2674_s23 }
  0xdc   : > { %v3545_v35 = vpop.permute.xlu1 %801 }
  0xdd   : > { %v3547_v12 = vpop.permute.xlu0 %799 }
  0xde   : > { %993 = vrot.lane.b32.xlu1 %v4817_v8, %s2674_s23 }
  0xdf   : > { %1371 = vrot.lane.b32.xlu0 %v3237_v10, %s2678_s14 }
  0xe0   : > { %v3553_v37 = vpop.permute.xlu1 %805 }
  0xe1   : > { %v3555_v53 = vpop.permute.xlu0 %803 }
  0xe2   : > { %1373 = vrot.lane.b32.xlu1 %v3234_v31, %s2678_s14 }
  0xe3   : > { %1087 = vrot.lane.b32.xlu0 %v3237_v10, %s2675_s30 }
  0xe4   : > { %v3561_v39 = vpop.permute.xlu1 %809 }
  0xe5   : > { %4818 = vst [vmem:[#allocation15_spill] sm:$0xff] %v3561_v39  ;;  %v3563_v17 = vpop.permute.xlu0 %807 }
  0xe6   : > { %1183 = vrot.lane.b32.xlu1 %v2863_v7, %s2676_s9 }
  0xe7   : > { %1089 = vrot.lane.b32.xlu0 %v3234_v31, %s2675_s30 }
  0xe8   : > { %v3569_v8 = vpop.permute.xlu1 %813 }
  0xe9   : > { %4819 = vst [vmem:[#allocation13_spill] sm:$0xff] %v3569_v8  ;;  %v3571_v49 = vpop.permute.xlu0 %811 }
  0xea   : > { %4820 = vst [vmem:[#allocation84_spill] sm:$0xff] %v3571_v49  ;;  %1279 = vrot.lane.b32.xlu1 %v4821_v29, %s2677_s13 }
  0xeb   : > { %1185 = vrot.lane.b32.xlu0 %v2855_v3, %s2676_s9 }
  0xec   : > { %v3577_v10 = vpop.permute.xlu1 %817 }
  0xed   : > { %4822 = vst [vmem:[#allocation17_spill] sm:$0xff] %v3577_v10  ;;  %v3579_v13 = vpop.permute.xlu0 %815 }
  0xee   : > { %4823 = vst [vmem:[#allocation85_spill] sm:$0xff] %v3579_v13  ;;  %1281 = vrot.lane.b32.xlu1 %v4824_v22, %s2677_s13  ;;  %v4849_v13 = vld [vmem:[#allocation27_spill] sm:$0xff] }
  0xef   : > { %995 = vrot.lane.b32.xlu0 %v4821_v29, %s2674_s23 }
  0xf0   : > { %v3585_v31 = vpop.permute.xlu1 %821 }
  0xf1   : > { %4825 = vst [vmem:[#allocation16_spill] sm:$0xff] %v3585_v31  ;;  %v3587_v8 = vpop.permute.xlu0 %819 }
  0xf2   : > { %4826 = vst [vmem:[#allocation86_spill] sm:$0xff] %v3587_v8  ;;  %997 = vrot.lane.b32.xlu1 %v4824_v22, %s2674_s23 }
  0xf3   : > { %1375 = vrot.lane.b32.xlu0 %v3250_v54, %s2678_s14 }
  0xf4   : > { %v3593_v49 = vpop.permute.xlu1 %825 }
  0xf5   : > { %4827 = vst [vmem:[#allocation87_spill] sm:$0xff] %v3593_v49  ;;  %v3595_v10 = vpop.permute.xlu0 %823 }
  0xf6   : > { %4828 = vst [vmem:[#allocation88_spill] sm:$0xff] %v3595_v10  ;;  %1377 = vrot.lane.b32.xlu1 %v3247_v24, %s2678_s14  ;;  %v4833_v10 = vld [vmem:[#allocation21_spill] sm:$0xff] }
  0xf7   : > { %1091 = vrot.lane.b32.xlu0 %v3250_v54, %s2675_s30 }
  0xf8   : > { %v3601_v29 = vpop.permute.xlu1 %829 }
  0xf9   : > { %4829 = vst [vmem:[#allocation89_spill] sm:$0xff] %v3601_v29  ;;  %v3603_v31 = vpop.permute.xlu0 %827 }
  0xfa   : > { %4830 = vst [vmem:[#allocation90_spill] sm:$0xff] %v3603_v31  ;;  %1187 = vrot.lane.b32.xlu1 %v2887_v23, %s2676_s9  ;;  %v4836_v31 = vld [vmem:[#allocation20_spill] sm:$0xff] }
  0xfb   : > { %1093 = vrot.lane.b32.xlu0 %v3247_v24, %s2675_s30 }
  0xfc   : > { %v3609_v22 = vpop.permute.xlu1 %833 }
  0xfd   : > { %4831 = vst [vmem:[#allocation91_spill] sm:$0xff] %v3609_v22  ;;  %v3611_v49 = vpop.permute.xlu0 %831 }
  0xfe   : > { %4832 = vst [vmem:[#allocation92_spill] sm:$0xff] %v3611_v49  ;;  %1283 = vrot.lane.b32.xlu1 %v4833_v10, %s2677_s13 }
  0xff   : > { %1189 = vrot.lane.b32.xlu0 %v2873_v16, %s2676_s9 }
 0x100   : > { %v3617_v54 = vpop.permute.xlu1 %837 }
 0x101   : > { %4834 = vst [vmem:[#allocation21_spill] sm:$0xff] %v3617_v54  ;;  %v3619_v29 = vpop.permute.xlu0 %835 }
 0x102   : > { %4835 = vst [vmem:[#allocation93_spill] sm:$0xff] %v3619_v29  ;;  %1285 = vrot.lane.b32.xlu1 %v4836_v31, %s2677_s13 }
 0x103   : > { %999 = vrot.lane.b32.xlu0 %v4833_v10, %s2674_s23 }
 0x104   : > { %v3625_v24 = vpop.permute.xlu1 %841 }
 0x105   : > { %4837 = vst [vmem:[#allocation20_spill] sm:$0xff] %v3625_v24  ;;  %v3627_v22 = vpop.permute.xlu0 %839 }
 0x106   : > { %4838 = vst [vmem:[#allocation94_spill] sm:$0xff] %v3627_v22  ;;  %1001 = vrot.lane.b32.xlu1 %v4836_v31, %s2674_s23 }
 0x107   : > { %1379 = vrot.lane.b32.xlu0 %v3263_v58, %s2678_s14 }
 0x108   : > { %v3633_v49 = vpop.permute.xlu1 %845 }
 0x109   : > { %4839 = vst [vmem:[#allocation95_spill] sm:$0xff] %v3633_v49  ;;  %v3635_v54 = vpop.permute.xlu0 %843 }
 0x10a   : > { %4840 = vst [vmem:[#allocation96_spill] sm:$0xff] %v3635_v54  ;;  %1381 = vrot.lane.b32.xlu1 %v3260_v18, %s2678_s14  ;;  %v4845_v54 = vld [vmem:[#allocation25_spill] sm:$0xff] }
 0x10b   : > { %1095 = vrot.lane.b32.xlu0 %v3263_v58, %s2675_s30 }
 0x10c   : > { %v3641_v10 = vpop.permute.xlu1 %849 }
 0x10d   : > { %4841 = vst [vmem:[#allocation97_spill] sm:$0xff] %v3641_v10  ;;  %v3643_v24 = vpop.permute.xlu0 %847 }
 0x10e   : > { %4842 = vst [vmem:[#allocation98_spill] sm:$0xff] %v3643_v24  ;;  %1191 = vrot.lane.b32.xlu1 %v2923_v50, %s2676_s9 }
 0x10f   : > { %1097 = vrot.lane.b32.xlu0 %v3260_v18, %s2675_s30 }
 0x110   : > { %v3649_v31 = vpop.permute.xlu1 %853 }
 0x111   : > { %4843 = vst [vmem:[#allocation99_spill] sm:$0xff] %v3649_v31  ;;  %v3651_v49 = vpop.permute.xlu0 %851 }
 0x112   : > { %4844 = vst [vmem:[#allocation100_spill] sm:$0xff] %v3651_v49  ;;  %1287 = vrot.lane.b32.xlu1 %v4845_v54, %s2677_s13  ;;  %v4846_v49 = vld [vmem:[#allocation24_spill] sm:$0xff] }
 0x113   : > { %1193 = vrot.lane.b32.xlu0 %v2917_v48, %s2676_s9 }
 0x114   : > { %v890_v58 = vpop.permute.xlu1 %889 }
 0x115   : > { %v888_v10 = vpop.permute.xlu0 %887 }
 0x116   : > { %1003 = vrot.lane.b32.xlu1 %v4845_v54, %s2674_s23 }
 0x117   : > { %909 = vrot.lane.b32.xlu0 %v2917_v48, %s2673_s18 }
 0x118   : > { %v3661_v24 = vpop.permute.xlu1 %893 }
 0x119   : > { %v3663_v18 = vpop.permute.xlu0 %891 }
 0x11a   : > { %1383 = vrot.lane.b32.xlu1 %v3276_v2, %s2678_s14 }
 0x11b   : > { %1289 = vrot.lane.b32.xlu0 %v4846_v49, %s2677_s13 }
 0x11c   : > { %v3669_v31 = vpop.permute.xlu1 %897 }
 0x11d   : > { %v3671_v22 = vpop.permute.xlu0 %895 }
 0x11e   : > { %1099 = vrot.lane.b32.xlu1 %v3276_v2, %s2675_s30 }
 0x11f   : > { %1005 = vrot.lane.b32.xlu0 %v4846_v49, %s2674_s23 }
 0x120   : > { %v3677_v54 = vpop.permute.xlu1 %901 }
 0x121   : > { %v3679_v29 = vpop.permute.xlu0 %899 }
 0x122   : > { %1101 = vrot.lane.b32.xlu1 %v3273_v63, %s2675_s30 }
 0x123   : > { %1385 = vrot.lane.b32.xlu0 %v3273_v63, %s2678_s14 }
 0x124   : > { %v3685_v8 = vpop.permute.xlu1 %905 }
 0x125   : > { %4847 = vst [vmem:[#allocation25_spill] sm:$0xff] %v3685_v8  ;;  %v3687_v48 = vpop.permute.xlu0 %903 }
 0x126   : > { %911 = vrot.lane.b32.xlu1 %v2950_v9, %s2673_s18 }
 0x127   : > { %1195 = vrot.lane.b32.xlu0 %v2950_v9, %s2676_s9  ;;  %v4850_v9 = vld [vmem:[#allocation26_spill] sm:$0xff] }
 0x128   : > { %v984_v2 = vpop.permute.xlu1 %983 }
 0x129   : > { %v3693_v49 = vpop.permute.xlu0 %907 }
 0x12a   : > { %4848 = vst [vmem:[#allocation24_spill] sm:$0xff] %v3693_v49  ;;  %1291 = vrot.lane.b32.xlu1 %v4849_v13, %s2677_s13 }
 0x12b   : > { %1197 = vrot.lane.b32.xlu0 %v2940_v61, %s2676_s9 }
 0x12c   : > { %v1080_v63 = vpop.permute.xlu1 %1079 }
 0x12d   : > { %v986_v50 = vpop.permute.xlu0 %985 }
 0x12e   : > { %1007 = vrot.lane.b32.xlu1 %v4849_v13, %s2674_s23  ;;  %v1464_v13 = vsel %vm1463_vm4, %v2776_v20, %v3373_v0  ;;  %v1465_v20 = vsel %vm1463_vm4, %v2779_v21, %v3390_v34 }
 0x12f   : > { %913 = vrot.lane.b32.xlu0 %v2940_v61, %s2673_s18  ;;  %v1497_v61 = vsel %vm1496_vm5, %v1464_v13, %v3531_v26  ;;  %v4852_v13 = vld [vmem:[#allocation28_spill] sm:$0xff] }
 0x130   : > { %v1176_v16 = vpop.permute.xlu1 %1175  ;;  %v1530_v8 = vsel %vm1529_vm6, %v1497_v61, %v888_v10  ;;  %v1498_v61 = vsel %vm1496_vm5, %v1465_v20, %v3529_v55 }
 0x131   : > { %v1082_v23 = vpop.permute.xlu0 %1081  ;;  %v1563_v62 = vsel %vm1562_vm7, %v1530_v8, %v984_v2  ;;  %v4851_v2 = vld [vmem:[#allocation29_spill] sm:$0xff] }
 0x132   : > { %1387 = vrot.lane.b32.xlu1 %v3289_v41, %s2678_s14  ;;  %v1596_v0 = vsel %vm1595_vm8, %v1563_v62, %v1080_v63  ;;  %v1466_v63 = vsel %vm1463_vm4, %v2766_v14, %v3371_v30  ;;  %v1467_v14 = vsel %vm1463_vm4, %v2773_v19, %v3388_v42 }
 0x133   : > { %1293 = vrot.lane.b32.xlu0 %v4850_v9, %s2677_s13  ;;  %v1499_v20 = vsel %vm1496_vm5, %v1466_v63, %v3539_v57  ;;  %v1500_v57 = vsel %vm1496_vm5, %v1467_v14, %v3537_v33  ;;  %v4854_v63 = vld [vmem:[#allocation31_spill] sm:$0xff] }
 0x134   : > { %v1272_v49 = vpop.permute.xlu1 %1271 }
 0x135   : > { %v1178_v4 = vpop.permute.xlu0 %1177 }
 0x136   : > { %1103 = vrot.lane.b32.xlu1 %v3289_v41, %s2675_s30  ;;  %v1531_v41 = vsel %vm1529_vm6, %v1498_v61, %v890_v58 }
 0x137   : > { %1009 = vrot.lane.b32.xlu0 %v4850_v9, %s2674_s23  ;;  %v1629_v9 = vsel %vm1628_vm9, %v1596_v0, %v1176_v16  ;;  %v1564_v34 = vsel %vm1562_vm7, %v1531_v41, %v986_v50  ;;  %v1532_v0 = vsel %vm1529_vm6, %v1499_v20, %v3663_v18 }
 0x138   : > { %v1274_v39 = vpop.permute.xlu1 %1273  ;;  %v1662_v26 = vsel %vm1661_vm10, %v1629_v9, %v1272_v49  ;;  %v1597_v10 = vsel %vm1595_vm8, %v1564_v34, %v1082_v23 }
 0x139   : > { %v988_v3 = vpop.permute.xlu0 %987  ;;  %v1630_v16 = vsel %vm1628_vm9, %v1597_v10, %v1178_v4 }
 0x13a   : > { %1105 = vrot.lane.b32.xlu1 %v3286_v44, %s2675_s30  ;;  %v1565_v41 = vsel %vm1562_vm7, %v1532_v0, %v988_v3  ;;  %v1533_v3 = vsel %vm1529_vm6, %v1500_v57, %v3661_v24 }
 0x13b   : > { %1389 = vrot.lane.b32.xlu0 %v3286_v44, %s2678_s14  ;;  %v1663_v44 = vsel %vm1661_vm10, %v1630_v16, %v1274_v39 }
 0x13c   : > { %v990_v8 = vpop.permute.xlu1 %989 }
 0x13d   : > { %v1368_v21 = vpop.permute.xlu0 %1367  ;;  %v1566_v42 = vsel %vm1562_vm7, %v1533_v3, %v990_v8 }
 0x13e   : > { %v1695_v62 = vsel %vm1694_vm11, %v1662_v26, %v1368_v21  ;;  %915 = vrot.lane.b32.xlu1 %v2961_v15, %s2673_s18 }
 0x13f   : > { %1199 = vrot.lane.b32.xlu0 %v2961_v15, %s2676_s9  ;;  %2506 = vmatprep.mubr.msk.f32.mxu0 %vm1739_vm12, %v1695_v62 }
 0x140   : > { %v1370_v55 = vpop.permute.xlu1 %1369 }
 0x141   : > { %v1084_v58 = vpop.permute.xlu0 %1083  ;;  %v1696_v50 = vsel %vm1694_vm11, %v1663_v44, %v1370_v55  ;;  %v4853_v44 = vld [vmem:[#allocation32_spill] sm:$0xff] }
 0x142   : > { %1295 = vrot.lane.b32.xlu1 %v4851_v2, %s2677_s13  ;;  %2507 = vmatmul.mubr.msk.f32.vlgmr.msra.gmra.mrb[0].mxu0 %vm1739_vm12, %v1696_v50  ;;  %v1598_v30 = vsel %vm1595_vm8, %v1565_v41, %v1084_v58  ;;  %v1468_v50 = vsel %vm1463_vm4, %v2822_v47, %v3404_v46  ;;  %v1469_v47 = vsel %vm1463_vm4, %v2791_v27, %v3402_v40 }
 0x143   : > { %1201 = vrot.lane.b32.xlu0 %v2954_v11, %s2676_s9 }
 0x144   : > { %v1180_v23 = vpop.permute.xlu1 %1179 }
 0x145   : > { %v1086_v49 = vpop.permute.xlu0 %1085  ;;  %v1631_v18 = vsel %vm1628_vm9, %v1598_v30, %v1180_v23 }
 0x146   : > { %1011 = vrot.lane.b32.xlu1 %v4851_v2, %s2674_s23  ;;  %v1501_v2 = vsel %vm1496_vm5, %v1468_v50, %v3547_v12  ;;  %v1502_v12 = vsel %vm1496_vm5, %v1469_v47, %v3545_v35 }
 0x147   : > { %917 = vrot.lane.b32.xlu0 %v2954_v11, %s2673_s18  ;;  %v1534_v23 = vsel %vm1529_vm6, %v1501_v2, %v3671_v22 }
 0x148   : > { %v1276_v4 = vpop.permute.xlu1 %1275 }
 0x149   : > { %v1182_v39 = vpop.permute.xlu0 %1181  ;;  %v1664_v26 = vsel %vm1661_vm10, %v1631_v18, %v1276_v4 }
 0x14a   : > { %1391 = vrot.lane.b32.xlu1 %v3302_v25, %s2678_s14 }
 0x14b   : > { %1297 = vrot.lane.b32.xlu0 %v4852_v13, %s2677_s13 }
 0x14c   : > { %v1278_v61 = vpop.permute.xlu1 %1277 }
 0x14d   : > { %v992_v9 = vpop.permute.xlu0 %991 }
 0x14e   : > { %1107 = vrot.lane.b32.xlu1 %v3302_v25, %s2675_s30  ;;  %v1599_v25 = vsel %vm1595_vm8, %v1566_v42, %v1086_v49 }
 0x14f   : > { %1013 = vrot.lane.b32.xlu0 %v4852_v13, %s2674_s23  ;;  %v1632_v33 = vsel %vm1628_vm9, %v1599_v25, %v1182_v39  ;;  %v1567_v39 = vsel %vm1562_vm7, %v1534_v23, %v992_v9  ;;  %v1535_v13 = vsel %vm1529_vm6, %v1502_v12, %v3669_v31 }
 0x150   : > { %v994_v21 = vpop.permute.xlu1 %993  ;;  %v1665_v24 = vsel %vm1661_vm10, %v1632_v33, %v1278_v61 }
 0x151   : > { %v1372_v19 = vpop.permute.xlu0 %1371  ;;  %v1568_v40 = vsel %vm1562_vm7, %v1535_v13, %v994_v21  ;;  %v4855_v21 = vld [vmem:[#allocation37_spill] sm:$0xff] }
 0x152   : > { %v1697_v34 = vsel %vm1694_vm11, %v1664_v26, %v1372_v19  ;;  %1109 = vrot.lane.b32.xlu1 %v3299_v52, %s2675_s30  ;;  %v1470_v26 = vsel %vm1463_vm4, %v2843_v60, %v3412_v5  ;;  %v1471_v60 = vsel %vm1463_vm4, %v2828_v51, %v3410_v1 }
 0x153   : > { %1393 = vrot.lane.b32.xlu0 %v3299_v52, %s2678_s14  ;;  %2509 = vmatprep.mubr.msk.f32.mxu0 %vm1739_vm12, %v1697_v34  ;;  %v1503_v19 = vsel %vm1496_vm5, %v1470_v26, %v3555_v53  ;;  %v1504_v53 = vsel %vm1496_vm5, %v1471_v60, %v3553_v37  ;;  %v4857_v37 = vld [vmem:[#allocation36_spill] sm:$0xff] }
 0x154   : > { %v1374_v62 = vpop.permute.xlu1 %1373  ;;  %v1536_v42 = vsel %vm1529_vm6, %v1503_v19, %v3679_v29 }
 0x155   : > { %v1088_v10 = vpop.permute.xlu0 %1087  ;;  %v1698_v8 = vsel %vm1694_vm11, %v1665_v24, %v1374_v62  ;;  %v1537_v24 = vsel %vm1529_vm6, %v1504_v53, %v3677_v54  ;;  %v4868_v53 = vld [vmem:[#allocation14_spill] sm:$0xff] }
 0x156   : > { %919 = vrot.lane.b32.xlu1 %v3005_v6, %s2673_s18  ;;  %2510 = vmatmul.mubr.msk.f32.gmra.mrb[2].mxu0 %vm1739_vm12, %v1698_v8  ;;  %v1600_v46 = vsel %vm1595_vm8, %v1567_v39, %v1088_v10 }
 0x157   : > { %1203 = vrot.lane.b32.xlu0 %v3005_v6, %s2676_s9 }
 0x158   : > { %v1184_v16 = vpop.permute.xlu1 %1183 }
 0x159   : > { %v1090_v52 = vpop.permute.xlu0 %1089  ;;  %v1633_v22 = vsel %vm1628_vm9, %v1600_v46, %v1184_v16 }
 0x15a   : > { %1299 = vrot.lane.b32.xlu1 %v4853_v44, %s2677_s13  ;;  %v1601_v9 = vsel %vm1595_vm8, %v1568_v40, %v1090_v52  ;;  %v4862_v40 = vld [vmem:[#allocation15_spill] sm:$0xff] }
 0x15b   : > { %1205 = vrot.lane.b32.xlu0 %v2986_v45, %s2676_s9 }
 0x15c   : > { %v1280_v55 = vpop.permute.xlu1 %1279 }
 0x15d   : > { %v1186_v58 = vpop.permute.xlu0 %1185  ;;  %v1666_v20 = vsel %vm1661_vm10, %v1633_v22, %v1280_v55 }
 0x15e   : > { %1015 = vrot.lane.b32.xlu1 %v4853_v44, %s2674_s23  ;;  %v1634_v35 = vsel %vm1628_vm9, %v1601_v9, %v1186_v58  ;;  %v4863_v9 = vld [vmem:[#allocation25_spill] sm:$0xff] }
 0x15f   : > { %921 = vrot.lane.b32.xlu0 %v2986_v45, %s2673_s18 }
 0x160   : > { %v1282_v49 = vpop.permute.xlu1 %1281 }
 0x161   : > { %v996_v4 = vpop.permute.xlu0 %995  ;;  %v1667_v31 = vsel %vm1661_vm10, %v1634_v35, %v1282_v49 }
 0x162   : > { %1395 = vrot.lane.b32.xlu1 %v3315_v32, %s2678_s14  ;;  %v1569_v33 = vsel %vm1562_vm7, %v1536_v42, %v996_v4  ;;  %v1472_v4 = vsel %vm1463_vm4, %v2863_v7, %v3420_v56  ;;  %v4858_v7 = vld [vmem:[#allocation40_spill] sm:$0xff]  ;;  %v4859_v56 = vld [vmem:[#allocation33_spill] sm:$0xff] }
 0x163   : > { %1301 = vrot.lane.b32.xlu0 %v4854_v63, %s2677_s13 }
 0x164   : > { %v998_v0 = vpop.permute.xlu1 %997 }
 0x165   : > { %v1376_v27 = vpop.permute.xlu0 %1375  ;;  %v1570_v1 = vsel %vm1562_vm7, %v1537_v24, %v998_v0  ;;  %v4861_v0 = vld [vmem:[#allocation11_spill] sm:$0xff] }
 0x166   : > { %v1699_v61 = vsel %vm1694_vm11, %v1666_v20, %v1376_v27  ;;  %1111 = vrot.lane.b32.xlu1 %v3315_v32, %s2675_s30  ;;  %v4860_v20 = vld [vmem:[#allocation64_spill] sm:$0xff]  ;;  %v4869_v24 = vld [vmem:[#allocation35_spill] sm:$0xff] }
 0x167   : > { %1017 = vrot.lane.b32.xlu0 %v4854_v63, %s2674_s23  ;;  %2512 = vmatprep.mubr.msk.f32.mxu0 %vm1739_vm12, %v1699_v61  ;;  %v1473_v27 = vsel %vm1463_vm4, %v4861_v0, %v4860_v20 }
 0x168   : > { %v1378_v41 = vpop.permute.xlu1 %1377  ;;  %v1506_v61 = vsel %vm1496_vm5, %v1473_v27, %v4862_v40 }
 0x169   : > { %v1092_v14 = vpop.permute.xlu0 %1091  ;;  %v1700_v30 = vsel %vm1694_vm11, %v1667_v31, %v1378_v41  ;;  %v1539_v35 = vsel %vm1529_vm6, %v1506_v61, %v4863_v9  ;;  %v4879_v9 = vld [vmem:[#allocation56_spill] sm:$0xff] }
 0x16a   : > { %1113 = vrot.lane.b32.xlu1 %v3312_v43, %s2675_s30  ;;  %2513 = vmatmul.mubr.msk.f32.gmra.mrb[4].mxu0 %vm1739_vm12, %v1700_v30  ;;  %v1602_v5 = vsel %vm1595_vm8, %v1569_v33, %v1092_v14 }
 0x16b   : > { %1397 = vrot.lane.b32.xlu0 %v3312_v43, %s2678_s14  ;;  %v4856_v43 = vld [vmem:[#allocation30_spill] sm:$0xff] }
 0x16c   : > { %v1188_v32 = vpop.permute.xlu1 %1187 }
 0x16d   : > { %v1094_v57 = vpop.permute.xlu0 %1093  ;;  %v1635_v29 = vsel %vm1628_vm9, %v1602_v5, %v1188_v32  ;;  %v4864_v32 = vld [vmem:[#allocation55_spill] sm:$0xff]  ;;  %v4867_v5 = vld [vmem:[#allocation66_spill] sm:$0xff] }
 0x16e   : > { %923 = vrot.lane.b32.xlu1 %v3030_v38, %s2673_s18  ;;  %v1603_v16 = vsel %vm1595_vm8, %v1570_v1, %v1094_v57  ;;  %v4865_v57 = vld [vmem:[#allocation39_spill] sm:$0xff] }
 0x16f   : > { %1207 = vrot.lane.b32.xlu0 %v3030_v38, %s2676_s9 }
 0x170   : > { %v1284_v18 = vpop.permute.xlu1 %1283 }
 0x171   : > { %v1190_v3 = vpop.permute.xlu0 %1189  ;;  %v1668_v62 = vsel %vm1661_vm10, %v1635_v29, %v1284_v18  ;;  %v1474_v29 = vsel %vm1463_vm4, %v4868_v53, %v4867_v5 }
 0x172   : > { %1303 = vrot.lane.b32.xlu1 %v4855_v21, %s2677_s13  ;;  %v1636_v52 = vsel %vm1628_vm9, %v1603_v16, %v1190_v3 }
 0x173   : > { %1209 = vrot.lane.b32.xlu0 %v4856_v43, %s2676_s9 }
 0x174   : > { %v1286_v34 = vpop.permute.xlu1 %1285 }
 0x175   : > { %v1000_v25 = vpop.permute.xlu0 %999  ;;  %v1669_v54 = vsel %vm1661_vm10, %v1636_v52, %v1286_v34 }
 0x176   : > { %1019 = vrot.lane.b32.xlu1 %v4855_v21, %s2674_s23 }
 0x177   : > { %925 = vrot.lane.b32.xlu0 %v4856_v43, %s2673_s18 }
 0x178   : > { %v1002_v10 = vpop.permute.xlu1 %1001 }
 0x179   : > { %v1380_v51 = vpop.permute.xlu0 %1379  ;;  %v1572_v14 = vsel %vm1562_vm7, %v1539_v35, %v1002_v10 }
 0x17a   : > { %v1701_v8 = vsel %vm1694_vm11, %v1668_v62, %v1380_v51  ;;  %1399 = vrot.lane.b32.xlu1 %v3328_v59, %s2678_s14  ;;  %v4870_v62 = vld [vmem:[#allocation84_spill] sm:$0xff] }
 0x17b   : > { %1305 = vrot.lane.b32.xlu0 %v4857_v37, %s2677_s13  ;;  %2515 = vmatprep.mubr.msk.f32.mxu0 %vm1739_vm12, %v1701_v8  ;;  %v1507_v10 = vsel %vm1496_vm5, %v1474_v29, %v4870_v62  ;;  %v4871_v51 = vld [vmem:[#allocation24_spill] sm:$0xff]  ;;  %v4886_v62 = vld [vmem:[#allocation67_spill] sm:$0xff] }
 0x17c   : > { %v1382_v44 = vpop.permute.xlu1 %1381  ;;  %v1540_v1 = vsel %vm1529_vm6, %v1507_v10, %v4871_v51  ;;  %v4887_v10 = vld [vmem:[#allocation18_spill] sm:$0xff] }
 0x17d   : > { %v1096_v55 = vpop.permute.xlu0 %1095  ;;  %v1702_v58 = vsel %vm1694_vm11, %v1669_v54, %v1382_v44  ;;  %v4872_v54 = vld [vmem:[#allocation43_spill] sm:$0xff]  ;;  %v4873_v44 = vld [vmem:[#allocation34_spill] sm:$0xff]  ;;  %v1477_v51 = vsel %vm1463_vm4, %v4887_v10, %v4886_v62 }
 0x17e   : > { %1115 = vrot.lane.b32.xlu1 %v3328_v59, %s2675_s30  ;;  %2516 = vmatmul.mubr.msk.f32.gmra.mrb[6].mxu0 %vm1739_vm12, %v1702_v58  ;;  %v1505_v59 = vsel %vm1496_vm5, %v1472_v4, %v3563_v17  ;;  %v4875_v4 = vld [vmem:[#allocation12_spill] sm:$0xff]  ;;  %v4902_v62 = vld [vmem:[#allocation50_spill] sm:$0xff] }
 0x17f   : > { %1021 = vrot.lane.b32.xlu0 %v4857_v37, %s2674_s23  ;;  %v1538_v39 = vsel %vm1529_vm6, %v1505_v59, %v3687_v48 }
 0x180   : > { %v1192_v50 = vpop.permute.xlu1 %1191  ;;  %v1571_v46 = vsel %vm1562_vm7, %v1538_v39, %v1000_v25  ;;  %v4866_v25 = vld [vmem:[#allocation54_spill] sm:$0xff]  ;;  %v4876_v39 = vld [vmem:[#allocation13_spill] sm:$0xff] }
 0x181   : > { %v1098_v2 = vpop.permute.xlu0 %1097  ;;  %v1604_v63 = vsel %vm1595_vm8, %v1571_v46, %v1096_v55 }
 0x182   : > { %1117 = vrot.lane.b32.xlu1 %v3325_v36, %s2675_s30  ;;  %v1637_v12 = vsel %vm1628_vm9, %v1604_v63, %v1192_v50  ;;  %v1605_v30 = vsel %vm1595_vm8, %v1572_v14, %v1098_v2  ;;  %v4881_v14 = vld [vmem:[#allocation19_spill] sm:$0xff] }
 0x183   : > { %1401 = vrot.lane.b32.xlu0 %v3325_v36, %s2678_s14 }
 0x184   : > { %v1288_v23 = vpop.permute.xlu1 %1287 }
 0x185   : > { %v1194_v49 = vpop.permute.xlu0 %1193  ;;  %v1670_v22 = vsel %vm1661_vm10, %v1637_v12, %v1288_v23 }
 0x186   : > { %927 = vrot.lane.b32.xlu1 %v3063_v28, %s2673_s18  ;;  %v1638_v18 = vsel %vm1628_vm9, %v1605_v30, %v1194_v49  ;;  %v4874_v49 = vld [vmem:[#allocation65_spill] sm:$0xff] }
 0x187   : > { %1211 = vrot.lane.b32.xlu0 %v3063_v28, %s2676_s9  ;;  %v1475_v59 = vsel %vm1463_vm4, %v4875_v4, %v4874_v49 }
 0x188   : > { %v1004_v47 = vpop.permute.xlu1 %1003 }
 0x189   : > { %v910_v36 = vpop.permute.xlu0 %909  ;;  %v1573_v37 = vsel %vm1562_vm7, %v1540_v1, %v1004_v47  ;;  %v1508_v47 = vsel %vm1496_vm5, %v1475_v59, %v4876_v39  ;;  %v4888_v1 = vld [vmem:[#allocation17_spill] sm:$0xff] }
 0x18a   : > { %1307 = vrot.lane.b32.xlu1 %v4858_v7, %s2677_s13  ;;  %v1541_v46 = vsel %vm1529_vm6, %v1508_v47, %v910_v36 }
 0x18b   : > { %1213 = vrot.lane.b32.xlu0 %v4859_v56, %s2676_s9 }
 0x18c   : > { %v1384_v17 = vpop.permute.xlu1 %1383 }
 0x18d   : > { %v1290_v13 = vpop.permute.xlu0 %1289  ;;  %v1703_v48 = vsel %vm1694_vm11, %v1670_v22, %v1384_v17  ;;  %v4877_v17 = vld [vmem:[#allocation57_spill] sm:$0xff] }
 0x18e   : > { %1023 = vrot.lane.b32.xlu1 %v4858_v7, %s2674_s23  ;;  %2518 = vmatprep.mubr.msk.f32.mxu0 %vm1739_vm12, %v1703_v48  ;;  %v1671_v3 = vsel %vm1661_vm10, %v1638_v18, %v1290_v13  ;;  %v4878_v13 = vld [vmem:[#allocation42_spill] sm:$0xff] }
 0x18f   : > { %929 = vrot.lane.b32.xlu0 %v4859_v56, %s2673_s18 }
 0x190   : > { %v1100_v31 = vpop.permute.xlu1 %1099 }
 0x191   : > { %v1006_v41 = vpop.permute.xlu0 %1005  ;;  %v1606_v52 = vsel %vm1595_vm8, %v1573_v37, %v1100_v31 }
 0x192   : > { %1403 = vrot.lane.b32.xlu1 %v4864_v32, %s2678_s14  ;;  %v1574_v12 = vsel %vm1562_vm7, %v1541_v46, %v1006_v41  ;;  %v4880_v41 = vld [vmem:[#allocation68_spill] sm:$0xff]  ;;  %v4891_v46 = vld [vmem:[#allocation58_spill] sm:$0xff] }
 0x193   : > { %1309 = vrot.lane.b32.xlu0 %v4865_v57, %s2677_s13  ;;  %v1476_v30 = vsel %vm1463_vm4, %v4881_v14, %v4880_v41 }
 0x194   : > { %v1102_v26 = vpop.permute.xlu1 %1101 }
 0x195   : > { %v1386_v21 = vpop.permute.xlu0 %1385  ;;  %v1607_v22 = vsel %vm1595_vm8, %v1574_v12, %v1102_v26  ;;  %v4892_v12 = vld [vmem:[#allocation70_spill] sm:$0xff] }
 0x196   : > { %v1704_v19 = vsel %vm1694_vm11, %v1671_v3, %v1386_v21  ;;  %1119 = vrot.lane.b32.xlu1 %v4864_v32, %s2675_s30  ;;  %v4882_v32 = vld [vmem:[#allocation41_spill] sm:$0xff] }
 0x197   : > { %1025 = vrot.lane.b32.xlu0 %v4865_v57, %s2674_s23  ;;  %2519 = vmatmul.mubr.msk.f32.gmra.mrb[8].mxu0 %vm1739_vm12, %v1704_v19  ;;  %v4883_v57 = vld [vmem:[#allocation85_spill] sm:$0xff] }
 0x198   : > { %v912_v42 = vpop.permute.xlu1 %911  ;;  %v1509_v18 = vsel %vm1496_vm5, %v1476_v30, %v4883_v57 }
 0x199   : > { %v1196_v34 = vpop.permute.xlu0 %1195  ;;  %v1542_v3 = vsel %vm1529_vm6, %v1509_v18, %v912_v42  ;;  %v4898_v18 = vld [vmem:[#allocation69_spill] sm:$0xff] }
 0x19a   : > { %1121 = vrot.lane.b32.xlu1 %v4866_v25, %s2675_s30  ;;  %v1639_v55 = vsel %vm1628_vm9, %v1606_v52, %v1196_v34 }
 0x19b   : > { %1405 = vrot.lane.b32.xlu0 %v4866_v25, %s2678_s14  ;;  %v4884_v25 = vld [vmem:[#allocation47_spill] sm:$0xff] }
 0x19c   : > { %v1292_v33 = vpop.permute.xlu1 %1291 }
 0x19d   : > { %v1198_v60 = vpop.permute.xlu0 %1197  ;;  %v1672_v58 = vsel %vm1661_vm10, %v1639_v55, %v1292_v33  ;;  %v4885_v33 = vld [vmem:[#allocation38_spill] sm:$0xff] }
 0x19e   : > { %931 = vrot.lane.b32.xlu1 %v4869_v24, %s2673_s18  ;;  %v1640_v48 = vsel %vm1628_vm9, %v1607_v22, %v1198_v60  ;;  %v4893_v22 = vld [vmem:[#allocation23_spill] sm:$0xff] }
 0x19f   : > { %1215 = vrot.lane.b32.xlu0 %v4869_v24, %s2676_s9 }
 0x1a0   : > { %v1008_v8 = vpop.permute.xlu1 %1007 }
 0x1a1   : > { %v914_v16 = vpop.permute.xlu0 %913  ;;  %v1575_v19 = vsel %vm1562_vm7, %v1542_v3, %v1008_v8  ;;  %v1510_v8 = vsel %vm1496_vm5, %v1477_v51, %v4888_v1  ;;  %v4899_v3 = vld [vmem:[#allocation22_spill] sm:$0xff] }
 0x1a2   : > { %1311 = vrot.lane.b32.xlu1 %v4872_v54, %s2677_s13  ;;  %v1543_v37 = vsel %vm1529_vm6, %v1510_v8, %v914_v16 }
 0x1a3   : > { %1217 = vrot.lane.b32.xlu0 %v4873_v44, %s2676_s9 }
 0x1a4   : > { %v1388_v50 = vpop.permute.xlu1 %1387 }
 0x1a5   : > { %v1294_v2 = vpop.permute.xlu0 %1293  ;;  %v1705_v23 = vsel %vm1694_vm11, %v1672_v58, %v1388_v50  ;;  %v4889_v50 = vld [vmem:[#allocation59_spill] sm:$0xff] }
 0x1a6   : > { %1027 = vrot.lane.b32.xlu1 %v4872_v54, %s2674_s23  ;;  %2521 = vmatprep.mubr.msk.f32.mxu0 %vm1739_vm12, %v1705_v23  ;;  %v1673_v20 = vsel %vm1661_vm10, %v1640_v48, %v1294_v2  ;;  %v4890_v2 = vld [vmem:[#allocation46_spill] sm:$0xff] }
 0x1a7   : > { %933 = vrot.lane.b32.xlu0 %v4873_v44, %s2673_s18  ;;  %v4895_v48 = vld [vmem:[#allocation86_spill] sm:$0xff] }
 0x1a8   : > { %v1104_v63 = vpop.permute.xlu1 %1103 }
 0x1a9   : > { %v1010_v7 = vpop.permute.xlu0 %1009  ;;  %v1608_v34 = vsel %vm1595_vm8, %v1575_v19, %v1104_v63  ;;  %v4900_v19 = vld [vmem:[#allocation16_spill] sm:$0xff] }
 0x1aa   : > { %1407 = vrot.lane.b32.xlu1 %v4877_v17, %s2678_s14  ;;  %v1576_v55 = vsel %vm1562_vm7, %v1543_v37, %v1010_v7 }
 0x1ab   : > { %1313 = vrot.lane.b32.xlu0 %v4878_v13, %s2677_s13 }
 0x1ac   : > { %v1106_v0 = vpop.permute.xlu1 %1105 }
 0x1ad   : > { %v1390_v27 = vpop.permute.xlu0 %1389  ;;  %v1609_v58 = vsel %vm1595_vm8, %v1576_v55, %v1106_v0 }
 0x1ae   : > { %v1706_v36 = vsel %vm1694_vm11, %v1673_v20, %v1390_v27  ;;  %1123 = vrot.lane.b32.xlu1 %v4877_v17, %s2675_s30  ;;  %v1478_v17 = vsel %vm1463_vm4, %v4893_v22, %v4892_v12 }
 0x1af   : > { %1029 = vrot.lane.b32.xlu0 %v4878_v13, %s2674_s23  ;;  %2522 = vmatmul.mubr.msk.f32.gmra.mrb[10].mxu0 %vm1739_vm12, %v1706_v36  ;;  %v4894_v13 = vld [vmem:[#allocation45_spill] sm:$0xff]  ;;  %v1511_v20 = vsel %vm1496_vm5, %v1478_v17, %v4895_v48 }
 0x1b0   : > { %v916_v40 = vpop.permute.xlu1 %915 }
 0x1b1   : > { %v1200_v61 = vpop.permute.xlu0 %1199  ;;  %v1544_v0 = vsel %vm1529_vm6, %v1511_v20, %v916_v40  ;;  %v4909_v20 = vld [vmem:[#allocation71_spill] sm:$0xff] }
 0x1b2   : > { %1125 = vrot.lane.b32.xlu1 %v4879_v9, %s2675_s30  ;;  %v1641_v60 = vsel %vm1628_vm9, %v1608_v34, %v1200_v61 }
 0x1b3   : > { %1409 = vrot.lane.b32.xlu0 %v4879_v9, %s2678_s14 }
 0x1b4   : > { %v1296_v35 = vpop.permute.xlu1 %1295 }
 0x1b5   : > { %v1202_v31 = vpop.permute.xlu0 %1201  ;;  %v1674_v5 = vsel %vm1661_vm10, %v1641_v60, %v1296_v35  ;;  %v4896_v35 = vld [vmem:[#allocation51_spill] sm:$0xff] }
 0x1b6   : > { %935 = vrot.lane.b32.xlu1 %v4882_v32, %s2673_s18  ;;  %v1642_v23 = vsel %vm1628_vm9, %v1609_v58, %v1202_v31  ;;  %v4897_v31 = vld [vmem:[#allocation44_spill] sm:$0xff] }
 0x1b7   : > { %1219 = vrot.lane.b32.xlu0 %v4882_v32, %s2676_s9 }
 0x1b8   : > { %v1012_v26 = vpop.permute.xlu1 %1011 }
 0x1b9   : > { %v918_v21 = vpop.permute.xlu0 %917  ;;  %v1577_v61 = vsel %vm1562_vm7, %v1544_v0, %v1012_v26  ;;  %v1479_v26 = vsel %vm1463_vm4, %v4899_v3, %v4898_v18  ;;  %v1481_v0 = vsel %vm1463_vm4, %v2954_v11, %v4909_v20  ;;  %v4912_v18 = vld [vmem:[#allocation52_spill] sm:$0xff] }
 0x1ba   : > { %1315 = vrot.lane.b32.xlu1 %v4884_v25, %s2677_s13  ;;  %v1512_v34 = vsel %vm1496_vm5, %v1479_v26, %v4900_v19 }
 0x1bb   : > { %1221 = vrot.lane.b32.xlu0 %v4885_v33, %s2676_s9 }
 0x1bc   : > { %v1392_v53 = vpop.permute.xlu1 %1391 }
 0x1bd   : > { %v1298_v29 = vpop.permute.xlu0 %1297  ;;  %v1707_v42 = vsel %vm1694_vm11, %v1674_v5, %v1392_v53 }
 0x1be   : > { %1031 = vrot.lane.b32.xlu1 %v4884_v25, %s2674_s23  ;;  %2524 = vmatprep.mubr.msk.f32.mxu0 %vm1739_vm12, %v1707_v42  ;;  %v1675_v49 = vsel %vm1661_vm10, %v1642_v23, %v1298_v29  ;;  %v1545_v25 = vsel %vm1529_vm6, %v1512_v34, %v918_v21  ;;  %v4901_v42 = vld [vmem:[#allocation61_spill] sm:$0xff] }
 0x1bf   : > { %937 = vrot.lane.b32.xlu0 %v4885_v33, %s2673_s18  ;;  %v4905_v23 = vld [vmem:[#allocation49_spill] sm:$0xff] }
 0x1c0   : > { %v1108_v52 = vpop.permute.xlu1 %1107 }
 0x1c1   : > { %v1014_v54 = vpop.permute.xlu0 %1013  ;;  %v1610_v9 = vsel %vm1595_vm8, %v1577_v61, %v1108_v52 }
 0x1c2   : > { %1411 = vrot.lane.b32.xlu1 %v4889_v50, %s2678_s14  ;;  %v1578_v53 = vsel %vm1562_vm7, %v1545_v25, %v1014_v54  ;;  %v4903_v54 = vld [vmem:[#allocation60_spill] sm:$0xff] }
 0x1c3   : > { %1317 = vrot.lane.b32.xlu0 %v4890_v2, %s2677_s13 }
 0x1c4   : > { %v1110_v4 = vpop.permute.xlu1 %1109 }
 0x1c5   : > { %v1394_v59 = vpop.permute.xlu0 %1393  ;;  %v1611_v29 = vsel %vm1595_vm8, %v1578_v53, %v1110_v4  ;;  %v4146_v53 = vld [vmem:[%s4626_s4] ss:$0 sm:$0xff] }
 0x1c6   : > { %v1708_v16 = vsel %vm1694_vm11, %v1675_v49, %v1394_v59  ;;  %1127 = vrot.lane.b32.xlu1 %v4889_v50, %s2675_s30  ;;  %v4904_v50 = vld [vmem:[#allocation72_spill] sm:$0xff] }
 0x1c7   : > { %1033 = vrot.lane.b32.xlu0 %v4890_v2, %s2674_s23  ;;  %2525 = vmatmul.mubr.msk.f32.gmra.mrb[12].mxu0 %vm1739_vm12, %v1708_v16  ;;  %v1480_v2 = vsel %vm1463_vm4, %v2961_v15, %v4904_v50  ;;  %v4906_v49 = vld [vmem:[#allocation88_spill] sm:$0xff]  ;;  %v4907_v15 = vld [vmem:[#allocation53_spill] sm:$0xff] }
 0x1c8   : > { %v920_v39 = vpop.permute.xlu1 %919  ;;  %v1513_v4 = vsel %vm1496_vm5, %v1480_v2, %v4906_v49  ;;  %v4915_v2 = vld [vmem:[#allocation90_spill] sm:$0xff] }
 0x1c9   : > { %v1204_v47 = vpop.permute.xlu0 %1203  ;;  %v1546_v59 = vsel %vm1529_vm6, %v1513_v4, %v920_v39 }
 0x1ca   : > { %1129 = vrot.lane.b32.xlu1 %v4891_v46, %s2675_s30  ;;  %v1643_v41 = vsel %vm1628_vm9, %v1610_v9, %v1204_v47 }
 0x1cb   : > { %1413 = vrot.lane.b32.xlu0 %v4891_v46, %s2678_s14 }
 0x1cc   : > { %v1300_v63 = vpop.permute.xlu1 %1299 }
 0x1cd   : > { %v1206_v7 = vpop.permute.xlu0 %1205  ;;  %v1676_v14 = vsel %vm1661_vm10, %v1643_v41, %v1300_v63 }
 0x1ce   : > { %939 = vrot.lane.b32.xlu1 %v4894_v13, %s2673_s18  ;;  %v1644_v10 = vsel %vm1628_vm9, %v1611_v29, %v1206_v7  ;;  %v4908_v7 = vld [vmem:[#allocation48_spill] sm:$0xff] }
 0x1cf   : > { %1223 = vrot.lane.b32.xlu0 %v4894_v13, %s2676_s9 }
 0x1d0   : > { %v1016_v27 = vpop.permute.xlu1 %1015 }
 0x1d1   : > { %v922_v36 = vpop.permute.xlu0 %921  ;;  %v1579_v46 = vsel %vm1562_vm7, %v1546_v59, %v1016_v27  ;;  %v4910_v27 = vld [vmem:[#allocation87_spill] sm:$0xff] }
 0x1d2   : > { %1319 = vrot.lane.b32.xlu1 %v4896_v35, %s2677_s13  ;;  %v1514_v61 = vsel %vm1496_vm5, %v1481_v0, %v4910_v27  ;;  %v4916_v27 = vld [vmem:[#allocation73_spill] sm:$0xff] }
 0x1d3   : > { %1225 = vrot.lane.b32.xlu0 %v4897_v31, %s2676_s9  ;;  %v1547_v9 = vsel %vm1529_vm6, %v1514_v61, %v922_v36  ;;  %v4132_v36 = vld [vmem:[%s4625_s3] ss:$0 sm:$0xff]  ;;  %v1483_v61 = vsel %vm1463_vm4, %v2986_v45, %v4916_v27 }
 0x1d4   : > { %v1396_v30 = vpop.permute.xlu1 %1395  ;;  %v337_v45 = vld [vmem:[%s2741_s11 + $0x1a0] sm:$0xff] }
 0x1d5   : > { %v1302_v57 = vpop.permute.xlu0 %1301  ;;  %v1709_v40 = vsel %vm1694_vm11, %v1676_v14, %v1396_v30  ;;  %v333_v14 = vld [vmem:[%s2741_s11 + $0x180] sm:$0xff]  ;;  %v334_v30 = vld [vmem:[%s2741_s11 + $0x188] sm:$0xff] }
 0x1d6   : > { %1035 = vrot.lane.b32.xlu1 %v4896_v35, %s2674_s23  ;;  %2527 = vmatprep.mubr.msk.f32.mxu0 %vm1739_vm12, %v1709_v40  ;;  %v1677_v51 = vsel %vm1661_vm10, %v1644_v10, %v1302_v57  ;;  %v4911_v40 = vld [vmem:[#allocation63_spill] sm:$0xff]  ;;  %v393_v26 = vmul.f32 %v4132_v36, %v333_v14  ;;  %v394_v19 = vmul.f32 %v4132_v36, %v334_v30 }
 0x1d7   : > { %941 = vrot.lane.b32.xlu0 %v4897_v31, %s2673_s18 }
 0x1d8   : > { %v1112_v60 = vpop.permute.xlu1 %1111  ;;  %v453_v29 = vadd.f32 %v4146_v53, %v393_v26 }
 0x1d9   : > { %v1018_v5 = vpop.permute.xlu0 %1017  ;;  %v1612_v63 = vsel %vm1595_vm8, %v1579_v46, %v1112_v60 }
 0x1da   : > { %1415 = vrot.lane.b32.xlu1 %v4901_v42, %s2678_s14  ;;  %v1580_v11 = vsel %vm1562_vm7, %v1547_v9, %v1018_v5  ;;  %v4917_v9 = vld [vmem:[#allocation89_spill] sm:$0xff] }
 0x1db   : > { %1321 = vrot.lane.b32.xlu0 %v4902_v62, %s2677_s13 }
 0x1dc   : > { %v1114_v1 = vpop.permute.xlu1 %1113 }
 0x1dd   : > { %v1398_v8 = vpop.permute.xlu0 %1397  ;;  %v1613_v57 = vsel %vm1595_vm8, %v1580_v11, %v1114_v1  ;;  %v4913_v1 = vld [vmem:[#allocation62_spill] sm:$0xff] }
 0x1de   : > { %v1710_v21 = vsel %vm1694_vm11, %v1677_v51, %v1398_v8  ;;  %1131 = vrot.lane.b32.xlu1 %v4901_v42, %s2675_s30  ;;  %v4150_v42 = vadd.f32 %v4146_v53, %v394_v19  ;;  %v335_v51 = vld [vmem:[%s2741_s11 + $0x190] sm:$0x3]  ;;  %v672_v8 = vrot.slane %v453_v29, 1 }
 0x1df   : > { %1037 = vrot.lane.b32.xlu0 %v4902_v62, %s2674_s23  ;;  %2528 = vmatmul.mubr.msk.f32.gmra.mrb[14].mxu0 %vm1739_vm12, %v1710_v21 }
 0x1e0   : > { %v4080_v37 = vpop.permute.xlu1 %923  ;;  %v673_v21 = vrot.slane %v4150_v42, 1 }
 0x1e1   : > { %v1208_v52 = vpop.permute.xlu0 %1207 }
 0x1e2   : > { %1133 = vrot.lane.b32.xlu1 %v4903_v54, %s2675_s30  ;;  %v1645_v12 = vsel %vm1628_vm9, %v1612_v63, %v1208_v52  ;;  %v395_v52 = vmul.f32 %v4132_v36, %v335_v51  ;;  %v674_v4 = vsel %vm507_vm1, %v672_v8, %v673_v21 }
 0x1e3   : > { %1417 = vrot.lane.b32.xlu0 %v4903_v54, %s2678_s14 }
 0x1e4   : > { %v1304_v55 = vpop.permute.xlu1 %1303  ;;  %v455_v59 = vadd.f32 %v4146_v53, %v395_v52 }
 0x1e5   : > { %v1210_v58 = vpop.permute.xlu0 %1209  ;;  %v1678_v22 = vsel %vm1661_vm10, %v1645_v12, %v1304_v55 }
 0x1e6   : > { %943 = vrot.lane.b32.xlu1 %v4905_v23, %s2673_s18  ;;  %v1646_v3 = vsel %vm1628_vm9, %v1613_v57, %v1210_v58  ;;  %v4914_v58 = vld [vmem:[#allocation74_spill] sm:$0xff] }
 0x1e7   : > { %1227 = vrot.lane.b32.xlu0 %v4905_v23, %s2676_s9  ;;  %v1482_v50 = vsel %vm1463_vm4, %v3005_v6, %v4914_v58 }
 0x1e8   : > { %v1020_v16 = vpop.permute.xlu1 %1019  ;;  %v1515_v49 = vsel %vm1496_vm5, %v1482_v50, %v4915_v2 }
 0x1e9   : > { %v4096_v47 = vpop.permute.xlu0 %925  ;;  %v1548_v46 = vsel %vm1529_vm6, %v1515_v49, %v4080_v37  ;;  %v675_v37 = vrot.slane %v455_v59, 1  ;;  %v4230_v49 = vld [vmem:[%s4624_s2] ss:$0 sm:$0xff] }
 0x1ea   : > { %1323 = vrot.lane.b32.xlu1 %v4907_v15, %s2677_s13  ;;  %v1581_v6 = vsel %vm1562_vm7, %v1548_v46, %v1020_v16 }
 0x1eb   : > { %1229 = vrot.lane.b32.xlu0 %v4908_v7, %s2676_s9  ;;  %v676_v30 = vsel %vm507_vm1, %v673_v21, %v675_v37 }
 0x1ec   : > { %v1400_v39 = vpop.permute.xlu1 %1399 }
 0x1ed   : > { %v1306_v17 = vpop.permute.xlu0 %1305  ;;  %v1711_v48 = vsel %vm1694_vm11, %v1678_v22, %v1400_v39  ;;  %v677_v39 = vrot.slane %v453_v29, 2 }
 0x1ee   : > { %1039 = vrot.lane.b32.xlu1 %v4907_v15, %s2674_s23  ;;  %2530 = vmatprep.mubr.msk.f32.mxu1 %vm1739_vm12, %v1711_v48  ;;  %v1679_v34 = vsel %vm1661_vm10, %v1646_v3, %v1306_v17  ;;  %v678_v17 = vrot.slane %v4150_v42, 2  ;;  %v338_v3 = vld [vmem:[%s2741_s11 + $0x1a8] sm:$0x3] }
 0x1ef   : > { %945 = vrot.lane.b32.xlu0 %v4908_v7, %s2673_s18 }
 0x1f0   : > { %v1116_v35 = vpop.permute.xlu1 %1115  ;;  %v679_v14 = vsel %vm588_vm2, %v677_v39, %v678_v17 }
 0x1f1   : > { %v4118_v41 = vpop.permute.xlu0 %1021  ;;  %v1614_v12 = vsel %vm1595_vm8, %v1581_v6, %v1116_v35  ;;  %v1516_v35 = vsel %vm1496_vm5, %v1483_v61, %v4917_v9 }
 0x1f2   : > { %1419 = vrot.lane.b32.xlu1 %v4911_v40, %s2678_s14  ;;  %v1549_v11 = vsel %vm1529_vm6, %v1516_v35, %v4096_v47  ;;  %v397_v47 = vmul.f32 %v4132_v36, %v337_v45 }
 0x1f3   : > { %1325 = vrot.lane.b32.xlu0 %v4912_v18, %s2677_s13  ;;  %v1582_v26 = vsel %vm1562_vm7, %v1549_v11, %v4118_v41 }
 0x1f4   : > { %v1118_v25 = vpop.permute.xlu1 %1117 }
 0x1f5   : > { %v1402_v60 = vpop.permute.xlu0 %1401  ;;  %v1615_v19 = vsel %vm1595_vm8, %v1582_v26, %v1118_v25 }
 0x1f6   : > { %v1712_v5 = vsel %vm1694_vm11, %v1679_v34, %v1402_v60  ;;  %1135 = vrot.lane.b32.xlu1 %v4911_v40, %s2675_s30  ;;  %v680_v34 = vrot.slane %v455_v59, 2  ;;  %v4919_v59 = vld [vmem:[#allocation92_spill] sm:$0xff] }
 0x1f7   : > { %1041 = vrot.lane.b32.xlu0 %v4912_v18, %s2674_s23  ;;  %2531 = vmatmul.mubr.msk.f32.vlgmr.msra.gmra.mrb[0].mxu1 %vm1739_vm12, %v1712_v5  ;;  %v336_v18 = vld [vmem:[%s2741_s11 + $0x198] sm:$0xff] }
 0x1f8   : > { %v4152_v62 = vpop.permute.xlu1 %927  ;;  %v396_v5 = vmul.f32 %v4132_v36, %v336_v18  ;;  %v681_v51 = vsel %vm588_vm2, %v678_v17, %v680_v34 }
 0x1f9   : > { %v1212_v10 = vpop.permute.xlu0 %1211 }
 0x1fa   : > { %1137 = vrot.lane.b32.xlu1 %v4913_v1, %s2675_s30  ;;  %v1647_v22 = vsel %vm1628_vm9, %v1614_v12, %v1212_v10  ;;  %v456_v8 = vadd.f32 %v4146_v53, %v396_v5  ;;  %v4920_v5 = vld [vmem:[#allocation8_spill] sm:$0xff] }
 0x1fb   : > { %1421 = vrot.lane.b32.xlu0 %v4913_v1, %s2678_s14  ;;  %v457_v1 = vadd.f32 %v4146_v53, %v397_v47 }
 0x1fc   : > { %v1308_v54 = vpop.permute.xlu1 %1307  ;;  %v685_v58 = vrot.slane %v456_v8, 1 }
 0x1fd   : > { %v1214_v55 = vpop.permute.xlu0 %1213  ;;  %v1680_v48 = vsel %vm1661_vm10, %v1647_v22, %v1308_v54  ;;  %v686_v54 = vrot.slane %v457_v1, 1  ;;  %v691_v12 = vrot.slane %v457_v1, 2 }
 0x1fe   : > { %947 = vrot.lane.b32.xlu1 %v453_v29, %s2673_s18  ;;  %v1648_v60 = vsel %vm1628_vm9, %v1615_v19, %v1214_v55 }
 0x1ff   : > { %1231 = vrot.lane.b32.xlu0 %v453_v29, %s2676_s9  ;;  %v398_v29 = vmul.f32 %v4132_v36, %v338_v3 }
 0x200   : > { %v4172_v63 = vpop.permute.xlu1 %1023 }
 0x201   : > { %v4174_v15 = vpop.permute.xlu0 %929  ;;  %v458_v36 = vadd.f32 %v4146_v53, %v398_v29  ;;  %v1485_v29 = vsel %vm1463_vm4, %v4856_v43, %v4920_v5 }
 0x202   : > { %1327 = vrot.lane.b32.xlu1 %v674_v4, %s2677_s13 }
 0x203   : > { %1233 = vrot.lane.b32.xlu0 %v4150_v42, %s2676_s9  ;;  %v688_v55 = vrot.slane %v458_v36, 1  ;;  %v693_v22 = vrot.slane %v458_v36, 2 }
 0x204   : > { %v1404_v20 = vpop.permute.xlu1 %1403 }
 0x205   : > { %v1310_v16 = vpop.permute.xlu0 %1309  ;;  %v1713_v0 = vsel %vm1694_vm11, %v1680_v48, %v1404_v20  ;;  %v689_v37 = vsel %vm507_vm1, %v686_v54, %v688_v55  ;;  %v687_v48 = vsel %vm507_vm1, %v685_v58, %v686_v54  ;;  %v690_v20 = vrot.slane %v456_v8, 2 }
 0x206   : > { %1043 = vrot.lane.b32.xlu1 %v674_v4, %s2674_s23  ;;  %2533 = vmatprep.mubr.msk.f32.mxu1 %vm1739_vm12, %v1713_v0  ;;  %v4918_v4 = vld [vmem:[#allocation75_spill] sm:$0xff] }
 0x207   : > { %949 = vrot.lane.b32.xlu0 %v4150_v42, %s2673_s18  ;;  %v1681_v42 = vsel %vm1661_vm10, %v1648_v60, %v1310_v16  ;;  %v1484_v53 = vsel %vm1463_vm4, %v3030_v38, %v4918_v4  ;;  %v692_v18 = vsel %vm588_vm2, %v690_v20, %v691_v12 }
 0x208   : > { %v1120_v57 = vpop.permute.xlu1 %1119  ;;  %v1517_v46 = vsel %vm1496_vm5, %v1484_v53, %v4919_v59 }
 0x209   : > { %v4198_v40 = vpop.permute.xlu0 %1025  ;;  %v1550_v38 = vsel %vm1529_vm6, %v1517_v46, %v4152_v62 }
 0x20a   : > { %1423 = vrot.lane.b32.xlu1 %v679_v14, %s2678_s14  ;;  %v1583_v61 = vsel %vm1562_vm7, %v1550_v38, %v4172_v63 }
 0x20b   : > { %1329 = vrot.lane.b32.xlu0 %v676_v30, %s2677_s13  ;;  %v1616_v35 = vsel %vm1595_vm8, %v1583_v61, %v1120_v57 }
 0x20c   : > { %v4213_v10 = vpop.permute.xlu1 %1121 }
 0x20d   : > { %v1406_v41 = vpop.permute.xlu0 %1405 }
 0x20e   : > { %v1714_v25 = vsel %vm1694_vm11, %v1681_v42, %v1406_v41  ;;  %1139 = vrot.lane.b32.xlu1 %v679_v14, %s2675_s30  ;;  %v4921_v41 = vld [vmem:[#allocation91_spill] sm:$0xff] }
 0x20f   : > { %1045 = vrot.lane.b32.xlu0 %v676_v30, %s2674_s23  ;;  %2534 = vmatmul.mubr.msk.f32.gmra.mrb[2].mxu1 %vm1739_vm12, %v1714_v25  ;;  %v694_v30 = vsel %vm588_vm2, %v691_v12, %v693_v22  ;;  %v1518_v25 = vsel %vm1496_vm5, %v1485_v29, %v4921_v41  ;;  %v4922_v22 = vld [vmem:[#allocation77_spill] sm:$0xff] }
 0x210   : > { %v4223_v21 = vpop.permute.xlu1 %931 }
 0x211   : > { %v1216_v52 = vpop.permute.xlu0 %1215 }
 0x212   : > { %1141 = vrot.lane.b32.xlu1 %v681_v51, %s2675_s30  ;;  %v1649_v62 = vsel %vm1628_vm9, %v1616_v35, %v1216_v52 }
 0x213   : > { %1425 = vrot.lane.b32.xlu0 %v681_v51, %s2678_s14 }
 0x214   : > { %v1312_v50 = vpop.permute.xlu1 %1311 }
 0x215   : > { %v1218_v2 = vpop.permute.xlu0 %1217  ;;  %v2508_v6 = vpop.f32.mrb[0].mxu0  ;;  %v1682_v63 = vsel %vm1661_vm10, %v1649_v62, %v1312_v50 }
 0x216   : > { %1237 = vrot.lane.b32.xlu1 %v457_v1, %s2676_s9  ;;  %v1912_v39 = vadd.f32 %v2508_v6, %v4230_v49  ;;  %v1906_v17 = vpop.f32.mrb[1].mxu0  ;;  %v1551_v1 = vsel %vm1529_vm6, %v1518_v25, %v4174_v15 }
 0x217   : > { %1235 = vrot.lane.b32.xlu0 %v456_v8, %s2676_s9  ;;  %v1907_v16 = vadd.f32 %v4230_v49, %v1906_v17  ;;  %v1584_v43 = vsel %vm1562_vm7, %v1551_v1, %v4198_v40 }
 0x218   : > { %v1028_v0 = vpop.permute.xlu1 %1027  ;;  %v2066_v9 = vmax.f32 %v1912_v39, 0.0  ;;  %v1617_v52 = vsel %vm1595_vm8, %v1584_v43, %v4213_v10  ;;  %v1486_v39 = vsel %vm1463_vm4, %v3063_v28, %v4922_v22 }
 0x219   : > { %v4245_v27 = vpop.permute.xlu0 %933  ;;  %v2065_v14 = vmax.f32 %v1907_v16, 0.0  ;;  %v1650_v54 = vsel %vm1628_vm9, %v1617_v52, %v1218_v2 }
 0x21a   : > { %1333 = vrot.lane.b32.xlu1 %v689_v37, %s2677_s13  ;;  %2098 = vst.msk [vmem:[%s2736_s8 + $0x8] sm:$0xff] %vm1496_vm5, %v2066_v9  ;;  %v2131_v11 = vsel %vm1496_vm5, %v2066_v9, 0.0  ;;  %v2204_v45 = vmul.f32 %v2066_v9, %v2066_v9  ;;  %v4923_v37 = vld [vmem:[#allocation93_spill] sm:$0xff] }
 0x21b   : > { %1331 = vrot.lane.b32.xlu0 %v687_v48, %s2677_s13  ;;  %2097 = vst.msk [vmem:[%s2736_s8] sm:$0xff] %vm1496_vm5, %v2065_v14  ;;  %v2130_v57 = vsel %vm1496_vm5, %v2065_v14, 0.0  ;;  %v2203_v3 = vmul.f32 %v2065_v14, %v2065_v14  ;;  %v1519_v48 = vsel %vm1496_vm5, %v1486_v39, %v4923_v37  ;;  %v4927_v37 = vld [vmem:[#allocation94_spill] sm:$0xff] }
 0x21c   : > { %v1408_v26 = vpop.permute.xlu1 %1407  ;;  %v2236_v34 = vsel %vm1496_vm5, %v2204_v45, 0.0  ;;  %v2132_v60 = vadd.f32 %v2131_v11, %v2130_v57  ;;  %v1552_v20 = vsel %vm1529_vm6, %v1519_v48, %v4223_v21 }
 0x21d   : > { %v1314_v19 = vpop.permute.xlu0 %1313  ;;  %v1715_v47 = vsel %vm1694_vm11, %v1682_v63, %v1408_v26  ;;  %v2235_v42 = vsel %vm1496_vm5, %v2203_v3, 0.0  ;;  %v1585_v28 = vsel %vm1562_vm7, %v1552_v20, %v1028_v0 }
 0x21e   : > { %1429 = vrot.lane.b32.xlu1 %v694_v30, %s2678_s14  ;;  %v2237_v51 = vadd.f32 %v2236_v34, %v2235_v42  ;;  %2536 = vmatprep.mubr.msk.f32.mxu1 %vm1739_vm12, %v1715_v47  ;;  %v1683_v55 = vsel %vm1661_vm10, %v1650_v54, %v1314_v19  ;;  %v4924_v34 = vld [vmem:[#allocation76_spill] sm:$0xff]  ;;  %v4925_v47 = vld [vmem:[#allocation21_spill] sm:$0xff] }
 0x21f   : > { %1427 = vrot.lane.b32.xlu0 %v692_v18, %s2678_s14 }
 0x220   : > { %v1124_v8 = vpop.permute.xlu1 %1123 }
 0x221   : > { %v1030_v36 = vpop.permute.xlu0 %1029  ;;  %v1618_v30 = vsel %vm1595_vm8, %v1585_v28, %v1124_v8 }
 0x224   : > { %v1126_v58 = vpop.permute.xlu1 %1125 }
 0x225   : > { %v1410_v50 = vpop.permute.xlu0 %1409 }
 0x226   : > { %v1716_v4 = vsel %vm1694_vm11, %v1683_v55, %v1410_v50 }
 0x227   : > { %2537 = vmatmul.mubr.msk.f32.gmra.mrb[4].mxu1 %vm1739_vm12, %v1716_v4 }
 0x228   : > { %v4283_v15 = vpop.permute.xlu1 %935 }
 0x229   : > { %v1220_v53 = vpop.permute.xlu0 %1219  ;;  %v2511_v59 = vpop.f32.mrb[2].mxu0 }
 0x22a   : > { %v1922_v40 = vadd.f32 %v2511_v59, %v4230_v49  ;;  %v1916_v46 = vpop.f32.mrb[3].mxu0  ;;  %v1651_v21 = vsel %vm1628_vm9, %v1618_v30, %v1220_v53 }
 0x22b   : > { %v1917_v10 = vadd.f32 %v4230_v49, %v1916_v46 }
 0x22c   : > { %v1316_v2 = vpop.permute.xlu1 %1315  ;;  %v2068_v12 = vmax.f32 %v1922_v40, 0.0 }
 0x22d   : > { %v1222_v6 = vpop.permute.xlu0 %1221  ;;  %v2067_v17 = vmax.f32 %v1917_v10, 0.0  ;;  %v1684_v57 = vsel %vm1661_vm10, %v1651_v21, %v1316_v2 }
 0x22e   : > { %2100 = vst.msk [vmem:[%s2736_s8 + $0x18] sm:$0xff] %vm1496_vm5, %v2068_v12  ;;  %v2206_v38 = vmul.f32 %v2068_v12, %v2068_v12  ;;  %v2135_v62 = vsel %vm1496_vm5, %v2068_v12, 0.0  ;;  %v4926_v12 = vld [vmem:[#allocation78_spill] sm:$0xff] }
 0x22f   : > { %2099 = vst.msk [vmem:[%s2736_s8 + $0x10] sm:$0xff] %vm1496_vm5, %v2067_v17  ;;  %v2133_v16 = vsel %vm1496_vm5, %v2067_v17, 0.0  ;;  %v2205_v61 = vmul.f32 %v2067_v17, %v2067_v17  ;;  %v1488_v22 = vsel %vm1463_vm4, %v4869_v24, %v4926_v12  ;;  %v4931_v12 = vld [vmem:[#allocation96_spill] sm:$0xff] }
 0x230   : > { %v1032_v9 = vpop.permute.xlu1 %1031  ;;  %v2134_v14 = vadd.f32 %v2133_v16, %v2132_v60  ;;  %v2240_v63 = vsel %vm1496_vm5, %v2206_v38, 0.0  ;;  %v1487_v60 = vsel %vm1463_vm4, %v4859_v56, %v4924_v34  ;;  %v1521_v48 = vsel %vm1496_vm5, %v1488_v22, %v4927_v37 }
 0x231   : > { %v4299_v35 = vpop.permute.xlu0 %937  ;;  %v2238_v11 = vsel %vm1496_vm5, %v2205_v61, 0.0  ;;  %v1520_v5 = vsel %vm1496_vm5, %v1487_v60, %v4925_v47  ;;  %v1554_v16 = vsel %vm1529_vm6, %v1521_v48, %v4283_v15 }
 0x232   : > { %v2239_v45 = vadd.f32 %v2238_v11, %v2237_v51  ;;  %v2136_v18 = vadd.f32 %v2135_v62, %v2134_v14  ;;  %v1553_v29 = vsel %vm1529_vm6, %v1520_v5, %v4245_v27  ;;  %v1587_v30 = vsel %vm1562_vm7, %v1554_v16, %v1032_v9 }
 0x233   : > { %v1586_v25 = vsel %vm1562_vm7, %v1553_v29, %v1030_v36 }
 0x234   : > { %v1412_v3 = vpop.permute.xlu1 %1411  ;;  %v2241_v0 = vadd.f32 %v2240_v63, %v2239_v45  ;;  %v1619_v51 = vsel %vm1595_vm8, %v1586_v25, %v1126_v58 }
 0x235   : > { %v1318_v26 = vpop.permute.xlu0 %1317  ;;  %v1717_v19 = vsel %vm1694_vm11, %v1684_v57, %v1412_v3  ;;  %v1652_v1 = vsel %vm1628_vm9, %v1619_v51, %v1222_v6  ;;  %v4928_v57 = vld [vmem:[#allocation10_spill] sm:$0xff]  ;;  %v4929_v3 = vld [vmem:[#allocation20_spill] sm:$0xff] }
 0x236   : > { %2539 = vmatprep.mubr.msk.f32.mxu1 %vm1739_vm12, %v1717_v19  ;;  %v1685_v56 = vsel %vm1661_vm10, %v1652_v1, %v1318_v26  ;;  %v1489_v15 = vsel %vm1463_vm4, %v4873_v44, %v4928_v57 }
 0x237   : > { %v1522_v9 = vsel %vm1496_vm5, %v1489_v15, %v4929_v3 }
 0x238   : > { %v1128_v42 = vpop.permute.xlu1 %1127  ;;  %v1555_v26 = vsel %vm1529_vm6, %v1522_v9, %v4299_v35 }
 0x239   : > { %v1034_v41 = vpop.permute.xlu0 %1033  ;;  %v1620_v24 = vsel %vm1595_vm8, %v1587_v30, %v1128_v42 }
 0x23a   : > { %v1588_v34 = vsel %vm1562_vm7, %v1555_v26, %v1034_v41 }
 0x23c   : > { %v1130_v8 = vpop.permute.xlu1 %1129 }
 0x23d   : > { %v1414_v43 = vpop.permute.xlu0 %1413  ;;  %v2514_v54 = vpop.f32.mrb[4].mxu0  ;;  %v1621_v60 = vsel %vm1595_vm8, %v1588_v34, %v1130_v8 }
 0x23e   : > { %v1718_v52 = vsel %vm1694_vm11, %v1685_v56, %v1414_v43  ;;  %v1932_v27 = vadd.f32 %v2514_v54, %v4230_v49  ;;  %v1926_v55 = vpop.f32.mrb[5].mxu0 }
 0x23f   : > { %2540 = vmatmul.mubr.msk.f32.gmra.mrb[6].mxu1 %vm1739_vm12, %v1718_v52  ;;  %v1927_v36 = vadd.f32 %v4230_v49, %v1926_v55 }
 0x240   : > { %v4325_v50 = vpop.permute.xlu1 %939  ;;  %v2070_v4 = vmax.f32 %v1932_v27, 0.0 }
 0x241   : > { %v1224_v58 = vpop.permute.xlu0 %1223  ;;  %v2069_v53 = vmax.f32 %v1927_v36, 0.0 }
 0x242   : > { %2102 = vst.msk [vmem:[%s2736_s8 + $0x28] sm:$0xff] %vm1496_vm5, %v2070_v4  ;;  %v2208_v59 = vmul.f32 %v2070_v4, %v2070_v4  ;;  %v2139_v39 = vsel %vm1496_vm5, %v2070_v4, 0.0  ;;  %v1653_v11 = vsel %vm1628_vm9, %v1620_v24, %v1224_v58 }
 0x243   : > { %2101 = vst.msk [vmem:[%s2736_s8 + $0x20] sm:$0xff] %vm1496_vm5, %v2069_v53  ;;  %v2137_v40 = vsel %vm1496_vm5, %v2069_v53, 0.0  ;;  %v2207_v46 = vmul.f32 %v2069_v53, %v2069_v53 }
 0x244   : > { %v1320_v10 = vpop.permute.xlu1 %1319  ;;  %v2138_v6 = vadd.f32 %v2137_v40, %v2136_v18  ;;  %v2244_v61 = vsel %vm1496_vm5, %v2208_v59, 0.0 }
 0x245   : > { %v1226_v2 = vpop.permute.xlu0 %1225  ;;  %v2242_v17 = vsel %vm1496_vm5, %v2207_v46, 0.0  ;;  %v1686_v21 = vsel %vm1661_vm10, %v1653_v11, %v1320_v10 }
 0x246   : > { %v2243_v20 = vadd.f32 %v2242_v17, %v2241_v0  ;;  %v2140_v38 = vadd.f32 %v2139_v39, %v2138_v6  ;;  %v1654_v5 = vsel %vm1628_vm9, %v1621_v60, %v1226_v2  ;;  %v4930_v2 = vld [vmem:[#allocation79_spill] sm:$0xff] }
 0x247   : > { %v1490_v6 = vsel %vm1463_vm4, %v4882_v32, %v4930_v2 }
 0x248   : > { %v1036_v28 = vpop.permute.xlu1 %1035  ;;  %v2245_v62 = vadd.f32 %v2244_v61, %v2243_v20  ;;  %v1523_v22 = vsel %vm1496_vm5, %v1490_v6, %v4931_v12 }
 0x249   : > { %v942_v14 = vpop.permute.xlu0 %941  ;;  %v1556_v39 = vsel %vm1529_vm6, %v1523_v22, %v4325_v50  ;;  %v4933_v50 = vld [vmem:[#allocation95_spill] sm:$0xff] }
 0x24a   : > { %v1589_v48 = vsel %vm1562_vm7, %v1556_v39, %v1036_v28 }
 0x24c   : > { %v1416_v45 = vpop.permute.xlu1 %1415 }
 0x24d   : > { %v1322_v18 = vpop.permute.xlu0 %1321  ;;  %v1719_v63 = vsel %vm1694_vm11, %v1686_v21, %v1416_v45 }
 0x24e   : > { %2542 = vmatprep.mubr.msk.f32.mxu1 %vm1739_vm12, %v1719_v63  ;;  %v1687_v42 = vsel %vm1661_vm10, %v1654_v5, %v1322_v18 }
 0x250   : > { %v1132_v19 = vpop.permute.xlu1 %1131 }
 0x251   : > { %v1038_v0 = vpop.permute.xlu0 %1037  ;;  %v2517_v47 = vpop.f32.mrb[6].mxu0  ;;  %v1622_v20 = vsel %vm1595_vm8, %v1589_v48, %v1132_v19 }
 0x252   : > { %v1942_v44 = vadd.f32 %v2517_v47, %v4230_v49  ;;  %v1936_v29 = vpop.f32.mrb[7].mxu0 }
 0x253   : > { %v1937_v25 = vadd.f32 %v4230_v49, %v1936_v29 }
 0x254   : > { %v1134_v51 = vpop.permute.xlu1 %1133  ;;  %v2072_v1 = vmax.f32 %v1942_v44, 0.0 }
 0x255   : > { %v1418_v35 = vpop.permute.xlu0 %1417  ;;  %v2071_v43 = vmax.f32 %v1937_v25, 0.0 }
 0x256   : > { %v1720_v56 = vsel %vm1694_vm11, %v1687_v42, %v1418_v35  ;;  %2104 = vst.msk [vmem:[%s2736_s8 + $0x38] sm:$0xff] %vm1496_vm5, %v2072_v1  ;;  %v2210_v41 = vmul.f32 %v2072_v1, %v2072_v1  ;;  %v2143_v36 = vsel %vm1496_vm5, %v2072_v1, 0.0 }
 0x257   : > { %2543 = vmatmul.mubr.msk.f32.gmra.mrb[8].mxu1 %vm1739_vm12, %v1720_v56  ;;  %2103 = vst.msk [vmem:[%s2736_s8 + $0x30] sm:$0xff] %vm1496_vm5, %v2071_v43  ;;  %v2141_v8 = vsel %vm1496_vm5, %v2071_v43, 0.0  ;;  %v2209_v52 = vmul.f32 %v2071_v43, %v2071_v43 }
 0x258   : > { %v944_v54 = vpop.permute.xlu1 %943  ;;  %v2142_v55 = vadd.f32 %v2141_v8, %v2140_v38  ;;  %v2248_v59 = vsel %vm1496_vm5, %v2210_v41, 0.0 }
 0x259   : > { %v1228_v27 = vpop.permute.xlu0 %1227  ;;  %v2246_v58 = vsel %vm1496_vm5, %v2209_v52, 0.0 }
 0x25a   : > { %v2247_v4 = vadd.f32 %v2246_v58, %v2245_v62  ;;  %v2144_v53 = vadd.f32 %v2143_v36, %v2142_v55  ;;  %v1655_v38 = vsel %vm1628_vm9, %v1622_v20, %v1228_v27  ;;  %v4932_v62 = vld [vmem:[#allocation9_spill] sm:$0xff]  ;;  %v4935_v36 = vld [vmem:[#allocation98_spill] sm:$0xff] }
 0x25b   : > { %v1491_v24 = vsel %vm1463_vm4, %v4885_v33, %v4932_v62  ;;  %v4934_v27 = vld [vmem:[#allocation81_spill] sm:$0xff] }
 0x25c   : > { %v1324_v40 = vpop.permute.xlu1 %1323  ;;  %v2249_v10 = vadd.f32 %v2248_v59, %v2247_v4  ;;  %v1524_v11 = vsel %vm1496_vm5, %v1491_v24, %v4933_v50  ;;  %v1492_v55 = vsel %vm1463_vm4, %v4894_v13, %v4934_v27  ;;  %v4936_v13 = vld [vmem:[#allocation80_spill] sm:$0xff] }
 0x25d   : > { %v1230_v46 = vpop.permute.xlu0 %1229  ;;  %v1688_v16 = vsel %vm1661_vm10, %v1655_v38, %v1324_v40  ;;  %v1557_v28 = vsel %vm1529_vm6, %v1524_v11, %v942_v14  ;;  %v1525_v58 = vsel %vm1496_vm5, %v1492_v55, %v4935_v36  ;;  %v1493_v39 = vsel %vm1463_vm4, %v4897_v31, %v4936_v13 }
 0x25e   : > { %v1590_v18 = vsel %vm1562_vm7, %v1557_v28, %v1038_v0  ;;  %v1558_v4 = vsel %vm1529_vm6, %v1525_v58, %v944_v54  ;;  %v4937_v54 = vld [vmem:[#allocation97_spill] sm:$0xff] }
 0x25f   : > { %v1623_v63 = vsel %vm1595_vm8, %v1590_v18, %v1134_v51  ;;  %v1526_v48 = vsel %vm1496_vm5, %v1493_v39, %v4937_v54 }
 0x260   : > { %v1040_v17 = vpop.permute.xlu1 %1039  ;;  %v1656_v15 = vsel %vm1628_vm9, %v1623_v63, %v1230_v46 }
 0x261   : > { %v946_v37 = vpop.permute.xlu0 %945  ;;  %v1591_v40 = vsel %vm1562_vm7, %v1558_v4, %v1040_v17 }
 0x262   : > { %v1559_v17 = vsel %vm1529_vm6, %v1526_v48, %v946_v37 }
 0x264   : > { %v1420_v61 = vpop.permute.xlu1 %1419 }
 0x265   : > { %v1326_v30 = vpop.permute.xlu0 %1325  ;;  %v1721_v32 = vsel %vm1694_vm11, %v1688_v16, %v1420_v61 }
 0x266   : > { %2545 = vmatprep.mubr.msk.f32.mxu1 %vm1739_vm12, %v1721_v32  ;;  %v1689_v9 = vsel %vm1661_vm10, %v1656_v15, %v1326_v30 }
 0x268   : > { %v1136_v21 = vpop.permute.xlu1 %1135 }
 0x269   : > { %v1042_v45 = vpop.permute.xlu0 %1041  ;;  %v1624_v46 = vsel %vm1595_vm8, %v1591_v40, %v1136_v21 }
 0x26a   : > { %v2520_v57 = vpop.f32.mrb[8].mxu0  ;;  %v1592_v16 = vsel %vm1562_vm7, %v1559_v17, %v1042_v45 }
 0x26b   : > { %v1952_v33 = vadd.f32 %v2520_v57, %v4230_v49  ;;  %v1946_v3 = vpop.f32.mrb[9].mxu0 }
 0x26c   : > { %v1947_v26 = vadd.f32 %v4230_v49, %v1946_v3  ;;  %v1138_v19 = vpop.permute.xlu1 %1137 }
 0x26d   : > { %v1422_v14 = vpop.permute.xlu0 %1421  ;;  %v2074_v34 = vmax.f32 %v1952_v33, 0.0  ;;  %v1625_v61 = vsel %vm1595_vm8, %v1592_v16, %v1138_v19  ;;  %v4939_v19 = vld [vmem:[#allocation83_spill] sm:$0xff] }
 0x26e   : > { %v1722_v60 = vsel %vm1694_vm11, %v1689_v9, %v1422_v14  ;;  %v2073_v47 = vmax.f32 %v1947_v26, 0.0  ;;  %v4938_v9 = vld [vmem:[#allocation82_spill] sm:$0xff]  ;;  %v1494_v14 = vsel %vm1463_vm4, %v4905_v23, %v4939_v19 }
 0x26f   : > { %2546 = vmatmul.mubr.msk.f32.gmra.mrb[10].mxu1 %vm1739_vm12, %v1722_v60  ;;  %2106 = vst.msk [vmem:[%s2736_s8 + $0x48] sm:$0xff] %vm1496_vm5, %v2074_v34  ;;  %v2212_v0 = vmul.f32 %v2074_v34, %v2074_v34  ;;  %v2147_v51 = vsel %vm1496_vm5, %v2074_v34, 0.0  ;;  %v1495_v26 = vsel %vm1463_vm4, %v4908_v7, %v4938_v9 }
 0x270   : > { %2105 = vst.msk [vmem:[%s2736_s8 + $0x40] sm:$0xff] %vm1496_vm5, %v2073_v47  ;;  %v2145_v5 = vsel %vm1496_vm5, %v2073_v47, 0.0  ;;  %v2211_v44 = vmul.f32 %v2073_v47, %v2073_v47  ;;  %v948_v29 = vpop.permute.xlu1 %947  ;;  %v4940_v47 = vld [vmem:[#allocation99_spill] sm:$0xff] }
 0x271   : > { %v1232_v42 = vpop.permute.xlu0 %1231  ;;  %v2146_v25 = vadd.f32 %v2145_v5, %v2144_v53  ;;  %v2252_v43 = vsel %vm1496_vm5, %v2212_v0, 0.0  ;;  %v1528_v0 = vsel %vm1496_vm5, %v1495_v26, %v4940_v47  ;;  %v4941_v5 = vld [vmem:[#allocation100_spill] sm:$0xff] }
 0x272   : > { %v2250_v35 = vsel %vm1496_vm5, %v2211_v44, 0.0  ;;  %v1527_v44 = vsel %vm1496_vm5, %v1494_v14, %v4941_v5 }
 0x273   : > { %v2251_v1 = vadd.f32 %v2250_v35, %v2249_v10  ;;  %v2148_v56 = vadd.f32 %v2147_v51, %v2146_v25  ;;  %v1657_v10 = vsel %vm1628_vm9, %v1624_v46, %v1232_v42  ;;  %v1560_v51 = vsel %vm1529_vm6, %v1527_v44, %v948_v29 }
 0x274   : > { %v1328_v41 = vpop.permute.xlu1 %1327 }
 0x275   : > { %v1234_v8 = vpop.permute.xlu0 %1233  ;;  %v2253_v52 = vadd.f32 %v2252_v43, %v2251_v1  ;;  %v1690_v2 = vsel %vm1661_vm10, %v1657_v10, %v1328_v41 }
 0x276   : > { %v1658_v32 = vsel %vm1628_vm9, %v1625_v61, %v1234_v8 }
 0x278   : > { %v1044_v53 = vpop.permute.xlu1 %1043 }
 0x279   : > { %v950_v59 = vpop.permute.xlu0 %949 }
 0x27a   : > { %v1561_v7 = vsel %vm1529_vm6, %v1528_v0, %v950_v59 }
 0x27c   : > { %v1424_v6 = vpop.permute.xlu1 %1423 }
 0x27d   : > { %v1330_v12 = vpop.permute.xlu0 %1329  ;;  %v1723_v22 = vsel %vm1694_vm11, %v1690_v2, %v1424_v6 }
 0x27e   : > { %2548 = vmatprep.mubr.msk.f32.mxu1 %vm1739_vm12, %v1723_v22  ;;  %v1691_v24 = vsel %vm1661_vm10, %v1658_v32, %v1330_v12 }
 0x280   : > { %v1140_v20 = vpop.permute.xlu1 %1139 }
 0x281   : > { %v1046_v38 = vpop.permute.xlu0 %1045 }
 0x282   : > { %v2523_v30 = vpop.f32.mrb[10].mxu0  ;;  %v1594_v43 = vsel %vm1562_vm7, %v1561_v7, %v1046_v38 }
 0x283   : > { %v1962_v31 = vadd.f32 %v2523_v30, %v4230_v49  ;;  %v1956_v62 = vpop.f32.mrb[11].mxu0 }
 0x284   : > { %v1957_v50 = vadd.f32 %v4230_v49, %v1956_v62  ;;  %v1142_v11 = vpop.permute.xlu1 %1141 }
 0x285   : > { %v1426_v37 = vpop.permute.xlu0 %1425  ;;  %v2076_v28 = vmax.f32 %v1962_v31, 0.0  ;;  %v1627_v27 = vsel %vm1595_vm8, %v1594_v43, %v1142_v11 }
 0x286   : > { %v1724_v21 = vsel %vm1694_vm11, %v1691_v24, %v1426_v37  ;;  %v2075_v18 = vmax.f32 %v1957_v50, 0.0 }
 0x287   : > { %2549 = vmatmul.mubr.msk.f32.gmra.mrb[12].mxu1 %vm1739_vm12, %v1724_v21  ;;  %2108 = vst.msk [vmem:[%s2736_s8 + $0x58] sm:$0xff] %vm1496_vm5, %v2076_v28  ;;  %v2214_v45 = vmul.f32 %v2076_v28, %v2076_v28  ;;  %v2151_v34 = vsel %vm1496_vm5, %v2076_v28, 0.0 }
 0x288   : > { %2107 = vst.msk [vmem:[%s2736_s8 + $0x50] sm:$0xff] %vm1496_vm5, %v2075_v18  ;;  %v2149_v63 = vsel %vm1496_vm5, %v2075_v18, 0.0  ;;  %v2213_v57 = vmul.f32 %v2075_v18, %v2075_v18  ;;  %v1238_v15 = vpop.permute.xlu1 %1237 }
 0x289   : > { %v1236_v33 = vpop.permute.xlu0 %1235  ;;  %v2150_v3 = vadd.f32 %v2149_v63, %v2148_v56  ;;  %v2256_v35 = vsel %vm1496_vm5, %v2214_v45, 0.0  ;;  %v1593_v56 = vsel %vm1562_vm7, %v1560_v51, %v1044_v53 }
 0x28a   : > { %v2254_v60 = vsel %vm1496_vm5, %v2213_v57, 0.0  ;;  %v1626_v8 = vsel %vm1595_vm8, %v1593_v56, %v1140_v20 }
 0x28b   : > { %v2255_v42 = vadd.f32 %v2254_v60, %v2253_v52  ;;  %v2152_v25 = vadd.f32 %v2151_v34, %v2150_v3  ;;  %v1660_v52 = vsel %vm1628_vm9, %v1627_v27, %v1238_v15  ;;  %v1659_v29 = vsel %vm1628_vm9, %v1626_v8, %v1236_v33 }
 0x28c   : > { %v1334_v1 = vpop.permute.xlu1 %1333 }
 0x28d   : > { %v1332_v23 = vpop.permute.xlu0 %1331  ;;  %v2257_v41 = vadd.f32 %v2256_v35, %v2255_v42  ;;  %v1693_v55 = vsel %vm1661_vm10, %v1660_v52, %v1334_v1 }
 0x28e   : > { %v1692_v36 = vsel %vm1661_vm10, %v1659_v29, %v1332_v23 }
 0x290   : > { %v1430_v58 = vpop.permute.xlu1 %1429 }
 0x291   : > { %v1428_v4 = vpop.permute.xlu0 %1427  ;;  %v1726_v53 = vsel %vm1694_vm11, %v1693_v55, %v1430_v58 }
 0x292   : > { %v1725_v59 = vsel %vm1694_vm11, %v1692_v36, %v1428_v4 }
 0x293   : > { %2551 = vmatprep.mubr.msk.f32.mxu1 %vm1739_vm12, %v1725_v59 }
 0x294   : > { %2552 = vmatmul.mubr.msk.f32.gmra.mrb[14].mxu1 %vm1739_vm12, %v1726_v53 }
 0x29a   : > { %v2526_v40 = vpop.f32.mrb[12].mxu0 }
 0x29b   : > { %v1972_v46 = vadd.f32 %v2526_v40, %v4230_v49  ;;  %v1966_v10 = vpop.f32.mrb[13].mxu0 }
 0x29c   : > { %v1967_v2 = vadd.f32 %v4230_v49, %v1966_v10 }
 0x29d   : > { %v2078_v6 = vmax.f32 %v1972_v46, 0.0 }
 0x29e   : > { %v2077_v12 = vmax.f32 %v1967_v2, 0.0 }
 0x29f   : > { %2110 = vst.msk [vmem:[%s2736_s8 + $0x68] sm:$0xff] %vm1496_vm5, %v2078_v6  ;;  %v2216_v22 = vmul.f32 %v2078_v6, %v2078_v6  ;;  %v2155_v48 = vsel %vm1496_vm5, %v2078_v6, 0.0 }
 0x2a0   : > { %2109 = vst.msk [vmem:[%s2736_s8 + $0x60] sm:$0xff] %vm1496_vm5, %v2077_v12  ;;  %v2153_v13 = vsel %vm1496_vm5, %v2077_v12, 0.0  ;;  %v2215_v39 = vmul.f32 %v2077_v12, %v2077_v12 }
 0x2a1   : > { %v2154_v54 = vadd.f32 %v2153_v13, %v2152_v25  ;;  %v2260_v16 = vsel %vm1496_vm5, %v2216_v22, 0.0 }
 0x2a2   : > { %v2258_v17 = vsel %vm1496_vm5, %v2215_v39, 0.0 }
 0x2a3   : > { %v2259_v20 = vadd.f32 %v2258_v17, %v2257_v41  ;;  %v2156_v38 = vadd.f32 %v2155_v48, %v2154_v54 }
 0x2a5   : > { %v2261_v61 = vadd.f32 %v2260_v16, %v2259_v20 }
 0x2b2   : > { %v2529_v30 = vpop.f32.mrb[14].mxu0 }
 0x2b3   : > { %v1982_v32 = vadd.f32 %v2529_v30, %v4230_v49  ;;  %v1976_v31 = vpop.f32.mrb[15].mxu0 }
 0x2b4   : > { %v1977_v62 = vadd.f32 %v4230_v49, %v1976_v31 }
 0x2b5   : > { %v2080_v24 = vmax.f32 %v1982_v32, 0.0 }
 0x2b6   : > { %v2079_v50 = vmax.f32 %v1977_v62, 0.0 }
 0x2b7   : > { %2112 = vst.msk [vmem:[%s2736_s8 + $0x78] sm:$0xff] %vm1496_vm5, %v2080_v24  ;;  %v2218_v11 = vmul.f32 %v2080_v24, %v2080_v24  ;;  %v2159_v18 = vsel %vm1496_vm5, %v2080_v24, 0.0 }
 0x2b8   : > { %2111 = vst.msk [vmem:[%s2736_s8 + $0x70] sm:$0xff] %vm1496_vm5, %v2079_v50  ;;  %v2157_v37 = vsel %vm1496_vm5, %v2079_v50, 0.0  ;;  %v2217_v28 = vmul.f32 %v2079_v50, %v2079_v50 }
 0x2b9   : > { %v2158_v21 = vadd.f32 %v2157_v37, %v2156_v38  ;;  %v2264_v15 = vsel %vm1496_vm5, %v2218_v11, 0.0 }
 0x2ba   : > { %v2262_v45 = vsel %vm1496_vm5, %v2217_v28, 0.0 }
 0x2bb   : > { %v2263_v63 = vadd.f32 %v2262_v45, %v2261_v61  ;;  %v2160_v57 = vadd.f32 %v2159_v18, %v2158_v21 }
 0x2bd   : > { %v2265_v33 = vadd.f32 %v2264_v15, %v2263_v63 }
 0x2ca   : > { %v2532_v3 = vpop.f32.mrb[0].mxu1 }
 0x2cb   : > { %v1992_v9 = vadd.f32 %v2532_v3, %v4230_v49  ;;  %v1986_v26 = vpop.f32.mrb[1].mxu1 }
 0x2cc   : > { %v1987_v19 = vadd.f32 %v4230_v49, %v1986_v26 }
 0x2cd   : > { %v2082_v14 = vmax.f32 %v1992_v9, 0.0 }
 0x2ce   : > { %v2081_v34 = vmax.f32 %v1987_v19, 0.0 }
 0x2cf   : > { %2114 = vst.msk [vmem:[%s2736_s8 + $0x88] sm:$0xff] %vm1496_vm5, %v2082_v14  ;;  %v2220_v60 = vmul.f32 %v2082_v14, %v2082_v14  ;;  %v2163_v44 = vsel %vm1496_vm5, %v2082_v14, 0.0 }
 0x2d0   : > { %2113 = vst.msk [vmem:[%s2736_s8 + $0x80] sm:$0xff] %vm1496_vm5, %v2081_v34  ;;  %v2161_v47 = vsel %vm1496_vm5, %v2081_v34, 0.0  ;;  %v2219_v0 = vmul.f32 %v2081_v34, %v2081_v34 }
 0x2d1   : > { %v2162_v5 = vadd.f32 %v2161_v47, %v2160_v57  ;;  %v2268_v7 = vsel %vm1496_vm5, %v2220_v60, 0.0 }
 0x2d2   : > { %v2266_v42 = vsel %vm1496_vm5, %v2219_v0, 0.0 }
 0x2d3   : > { %v2267_v25 = vadd.f32 %v2266_v42, %v2265_v33  ;;  %v2164_v51 = vadd.f32 %v2163_v44, %v2162_v5 }
 0x2d5   : > { %v2269_v35 = vadd.f32 %v2268_v7, %v2267_v25 }
 0x2e2   : > { %v2535_v1 = vpop.f32.mrb[2].mxu1 }
 0x2e3   : > { %v2002_v23 = vadd.f32 %v2535_v1, %v4230_v49  ;;  %v1996_v56 = vpop.f32.mrb[3].mxu1 }
 0x2e4   : > { %v1997_v43 = vadd.f32 %v4230_v49, %v1996_v56 }
 0x2e5   : > { %v2084_v41 = vmax.f32 %v2002_v23, 0.0 }
 0x2e6   : > { %v2083_v8 = vmax.f32 %v1997_v43, 0.0 }
 0x2e7   : > { %2116 = vst.msk [vmem:[%s2736_s8 + $0x98] sm:$0xff] %vm1496_vm5, %v2084_v41  ;;  %v2222_v27 = vmul.f32 %v2084_v41, %v2084_v41  ;;  %v2167_v36 = vsel %vm1496_vm5, %v2084_v41, 0.0 }
 0x2e8   : > { %2115 = vst.msk [vmem:[%s2736_s8 + $0x90] sm:$0xff] %vm1496_vm5, %v2083_v8  ;;  %v2165_v52 = vsel %vm1496_vm5, %v2083_v8, 0.0  ;;  %v2221_v29 = vmul.f32 %v2083_v8, %v2083_v8 }
 0x2e9   : > { %v2166_v55 = vadd.f32 %v2165_v52, %v2164_v51  ;;  %v2272_v59 = vsel %vm1496_vm5, %v2222_v27, 0.0 }
 0x2ea   : > { %v2270_v58 = vsel %vm1496_vm5, %v2221_v29, 0.0 }
 0x2eb   : > { %v2271_v4 = vadd.f32 %v2270_v58, %v2269_v35  ;;  %v2168_v53 = vadd.f32 %v2167_v36, %v2166_v55 }
 0x2ed   : > { %v2273_v40 = vadd.f32 %v2272_v59, %v2271_v4 }
 0x2fa   : > { %v2538_v46 = vpop.f32.mrb[4].mxu1 }
 0x2fb   : > { %v2012_v10 = vadd.f32 %v2538_v46, %v4230_v49  ;;  %v2006_v2 = vpop.f32.mrb[5].mxu1 }
 0x2fc   : > { %v2007_v6 = vadd.f32 %v4230_v49, %v2006_v2 }
 0x2fd   : > { %v2086_v12 = vmax.f32 %v2012_v10, 0.0 }
 0x2fe   : > { %v2085_v22 = vmax.f32 %v2007_v6, 0.0 }
 0x2ff   : > { %2118 = vst.msk [vmem:[%s2736_s8 + $0xa8] sm:$0xff] %vm1496_vm5, %v2086_v12  ;;  %v2224_v13 = vmul.f32 %v2086_v12, %v2086_v12  ;;  %v2171_v17 = vsel %vm1496_vm5, %v2086_v12, 0.0 }
 0x300   : > { %2117 = vst.msk [vmem:[%s2736_s8 + $0xa0] sm:$0xff] %vm1496_vm5, %v2085_v22  ;;  %v2169_v39 = vsel %vm1496_vm5, %v2085_v22, 0.0  ;;  %v2223_v54 = vmul.f32 %v2085_v22, %v2085_v22 }
 0x301   : > { %v2170_v48 = vadd.f32 %v2169_v39, %v2168_v53  ;;  %v2276_v61 = vsel %vm1496_vm5, %v2224_v13, 0.0 }
 0x302   : > { %v2274_v20 = vsel %vm1496_vm5, %v2223_v54, 0.0 }
 0x303   : > { %v2275_v38 = vadd.f32 %v2274_v20, %v2273_v40  ;;  %v2172_v16 = vadd.f32 %v2171_v17, %v2170_v48 }
 0x305   : > { %v2277_v30 = vadd.f32 %v2276_v61, %v2275_v38 }
 0x312   : > { %v2541_v32 = vpop.f32.mrb[6].mxu1 }
 0x313   : > { %v2022_v31 = vadd.f32 %v2541_v32, %v4230_v49  ;;  %v2016_v62 = vpop.f32.mrb[7].mxu1 }
 0x314   : > { %v2017_v24 = vadd.f32 %v4230_v49, %v2016_v62 }
 0x315   : > { %v2088_v50 = vmax.f32 %v2022_v31, 0.0 }
 0x316   : > { %v2087_v11 = vmax.f32 %v2017_v24, 0.0 }
 0x317   : > { %2120 = vst.msk [vmem:[%s2736_s8 + $0xb8] sm:$0xff] %vm1496_vm5, %v2088_v50  ;;  %v2226_v37 = vmul.f32 %v2088_v50, %v2088_v50  ;;  %v2175_v45 = vsel %vm1496_vm5, %v2088_v50, 0.0 }
 0x318   : > { %2119 = vst.msk [vmem:[%s2736_s8 + $0xb0] sm:$0xff] %vm1496_vm5, %v2087_v11  ;;  %v2173_v28 = vsel %vm1496_vm5, %v2087_v11, 0.0  ;;  %v2225_v21 = vmul.f32 %v2087_v11, %v2087_v11 }
 0x319   : > { %v2174_v18 = vadd.f32 %v2173_v28, %v2172_v16  ;;  %v2280_v33 = vsel %vm1496_vm5, %v2226_v37, 0.0 }
 0x31a   : > { %v2278_v63 = vsel %vm1496_vm5, %v2225_v21, 0.0 }
 0x31b   : > { %v2279_v57 = vadd.f32 %v2278_v63, %v2277_v30  ;;  %v2176_v15 = vadd.f32 %v2175_v45, %v2174_v18 }
 0x31d   : > { %v2281_v3 = vadd.f32 %v2280_v33, %v2279_v57 }
 0x32a   : > { %v2544_v9 = vpop.f32.mrb[8].mxu1 }
 0x32b   : > { %v2032_v26 = vadd.f32 %v2544_v9, %v4230_v49  ;;  %v2026_v19 = vpop.f32.mrb[9].mxu1 }
 0x32c   : > { %v2027_v14 = vadd.f32 %v4230_v49, %v2026_v19 }
 0x32d   : > { %v2090_v34 = vmax.f32 %v2032_v26, 0.0 }
 0x32e   : > { %v2089_v60 = vmax.f32 %v2027_v14, 0.0 }
 0x32f   : > { %2122 = vst.msk [vmem:[%s2736_s8 + $0xc8] sm:$0xff] %vm1496_vm5, %v2090_v34  ;;  %v2228_v47 = vmul.f32 %v2090_v34, %v2090_v34  ;;  %v2179_v42 = vsel %vm1496_vm5, %v2090_v34, 0.0 }
 0x330   : > { %2121 = vst.msk [vmem:[%s2736_s8 + $0xc0] sm:$0xff] %vm1496_vm5, %v2089_v60  ;;  %v2177_v0 = vsel %vm1496_vm5, %v2089_v60, 0.0  ;;  %v2227_v5 = vmul.f32 %v2089_v60, %v2089_v60 }
 0x331   : > { %v2178_v44 = vadd.f32 %v2177_v0, %v2176_v15  ;;  %v2284_v35 = vsel %vm1496_vm5, %v2228_v47, 0.0 }
 0x332   : > { %v2282_v25 = vsel %vm1496_vm5, %v2227_v5, 0.0 }
 0x333   : > { %v2283_v51 = vadd.f32 %v2282_v25, %v2281_v3  ;;  %v2180_v7 = vadd.f32 %v2179_v42, %v2178_v44  ;;  %v2129_v44 = vld [vmem:[#allocation2] sm:$0x1] }
 0x335   : > { %v2285_v1 = vadd.f32 %v2284_v35, %v2283_v51  ;;  %v2202_v51 = vld [vmem:[#allocation4] sm:$0x1] }
 0x342   : > { %v2547_v23 = vpop.f32.mrb[10].mxu1 }
 0x343   : > { %v2042_v56 = vadd.f32 %v2547_v23, %v4230_v49  ;;  %v2036_v43 = vpop.f32.mrb[11].mxu1 }
 0x344   : > { %v2037_v41 = vadd.f32 %v4230_v49, %v2036_v43 }
 0x345   : > { %v2092_v8 = vmax.f32 %v2042_v56, 0.0 }
 0x346   : > { %v2091_v27 = vmax.f32 %v2037_v41, 0.0 }
 0x347   : > { %2124 = vst.msk [vmem:[%s2736_s8 + $0xd8] sm:$0xff] %vm1496_vm5, %v2092_v8  ;;  %v2230_v52 = vmul.f32 %v2092_v8, %v2092_v8  ;;  %v2183_v58 = vsel %vm1496_vm5, %v2092_v8, 0.0 }
 0x348   : > { %2123 = vst.msk [vmem:[%s2736_s8 + $0xd0] sm:$0xff] %vm1496_vm5, %v2091_v27  ;;  %v2181_v29 = vsel %vm1496_vm5, %v2091_v27, 0.0  ;;  %v2229_v55 = vmul.f32 %v2091_v27, %v2091_v27 }
 0x349   : > { %v2182_v36 = vadd.f32 %v2181_v29, %v2180_v7  ;;  %v2288_v40 = vsel %vm1496_vm5, %v2230_v52, 0.0 }
 0x34a   : > { %v2286_v4 = vsel %vm1496_vm5, %v2229_v55, 0.0 }
 0x34b   : > { %v2287_v53 = vadd.f32 %v2286_v4, %v2285_v1  ;;  %v2184_v59 = vadd.f32 %v2183_v58, %v2182_v36 }
 0x34d   : > { %v2289_v46 = vadd.f32 %v2288_v40, %v2287_v53 }
 0x35a   : > { %v2550_v10 = vpop.f32.mrb[12].mxu1 }
 0x35b   : > { %v2052_v2 = vadd.f32 %v2550_v10, %v4230_v49  ;;  %v2046_v6 = vpop.f32.mrb[13].mxu1 }
 0x35c   : > { %v2047_v12 = vadd.f32 %v4230_v49, %v2046_v6 }
 0x35d   : > { %v2094_v22 = vmax.f32 %v2052_v2, 0.0 }
 0x35e   : > { %v2093_v13 = vmax.f32 %v2047_v12, 0.0 }
 0x35f   : > { %2126 = vst.msk [vmem:[%s2736_s8 + $0xe8] sm:$0xff] %vm1496_vm5, %v2094_v22  ;;  %v2232_v39 = vmul.f32 %v2094_v22, %v2094_v22  ;;  %v2187_v20 = vsel %vm1496_vm5, %v2094_v22, 0.0 }
 0x360   : > { %2125 = vst.msk [vmem:[%s2736_s8 + $0xe0] sm:$0xff] %vm1496_vm5, %v2093_v13  ;;  %v2185_v54 = vsel %vm1496_vm5, %v2093_v13, 0.0  ;;  %v2231_v48 = vmul.f32 %v2093_v13, %v2093_v13 }
 0x361   : > { %v2186_v17 = vadd.f32 %v2185_v54, %v2184_v59  ;;  %v2292_v30 = vsel %vm1496_vm5, %v2232_v39, 0.0 }
 0x362   : > { %v2290_v38 = vsel %vm1496_vm5, %v2231_v48, 0.0 }
 0x363   : > { %v2291_v16 = vadd.f32 %v2290_v38, %v2289_v46  ;;  %v2188_v61 = vadd.f32 %v2187_v20, %v2186_v17 }
 0x365   : > { %v2293_v32 = vadd.f32 %v2292_v30, %v2291_v16 }
 0x367   : > { %v2553_v31 = vpop.f32.mrb[14].mxu1 }
 0x368   : > { %v2062_v62 = vadd.f32 %v2553_v31, %v4230_v49  ;;  %v2056_v24 = vpop.f32.mrb[15].mxu1 }
 0x369   : > { %v2057_v50 = vadd.f32 %v4230_v49, %v2056_v24 }
 0x36a   : > { %v2096_v11 = vmax.f32 %v2062_v62, 0.0 }
 0x36b   : > { %v2095_v37 = vmax.f32 %v2057_v50, 0.0 }
 0x36c   : > { %2128 = vst.msk [vmem:[%s2736_s8 + $0xf8] sm:$0xff] %vm1496_vm5, %v2096_v11  ;;  %v2234_v28 = vmul.f32 %v2096_v11, %v2096_v11  ;;  %v2191_v63 = vsel %vm1496_vm5, %v2096_v11, 0.0 }
 0x36d   : > { %2127 = vst.msk [vmem:[%s2736_s8 + $0xf0] sm:$0xff] %vm1496_vm5, %v2095_v37  ;;  %v2189_v21 = vsel %vm1496_vm5, %v2095_v37, 0.0  ;;  %v2233_v18 = vmul.f32 %v2095_v37, %v2095_v37  ;;  %s2679_s8 = smov [#allocation2]  }
 0x36e   : > { %v2190_v45 = vadd.f32 %v2189_v21, %v2188_v61  ;;  %v2296_v3 = vsel %vm1496_vm5, %v2234_v28, 0.0  ;;  %s2321_s20 = sshll.u32 %s2679_s8, 4  ;;  %s2322_s20 = int_to_ptr.vmem [resolvable:$true] %s2321_s20 }
 0x36f   : > { %v2294_v57 = vsel %vm1496_vm5, %v2233_v18, 0.0  ;;  %s2602_s23 = scalar_lea.vmem %s2322_s20, 16  ;;  %s2608_s26 = scalar_lea.vmem %s2322_s20, 32 }
 0x370   : > { %v2192_v15 = vadd.f32 %v2191_v63, %v2190_v45  ;;  %v2295_v33 = vadd.f32 %v2294_v57, %v2293_v32  ;;  %p2603_p6 = scmp.ne.s32.totalorder %s2322_s20, %s2602_s23  ;;  %p2609_p9 = scmp.lt.s32.totalorder %s2322_s20, %s2322_s20 }
 0x371   : > { %p2610_p10 = scmp.lt.s32.totalorder %s2608_s26, %s2602_s23 }
 0x372   : > { %v2193_v49 = vrot.slane %v2192_v15, 4  ;;  %v2297_v9 = vadd.f32 %v2296_v3, %v2295_v33  ;;  %p2604_p7 = pnand %p2603_p6, %p2577_p5 }
 0x373   : > { %p2611_p11 = por %p2610_p10, %p2609_p9 }
 0x374   : > { %v2194_v26 = vadd.f32 %v2193_v49, %v2192_v15  ;;  %v2298_v19 = vrot.slane %v2297_v9, 4  ;;  %p2605_p8 = pneg %p2604_p7 }
 0x376   : > { %v2195_v14 = vrot.slane %v2194_v26, 2  ;;  %v2299_v34 = vadd.f32 %v2298_v19, %v2297_v9  ;;  %p2612_p12 = pnand %p2611_p11, %p2605_p8 }
 0x378   : > { %v2196_v60 = vadd.f32 %v2195_v14, %v2194_v26  ;;  %v2300_v47 = vrot.slane %v2299_v34, 2 }
 0x37a   : > { %v2197_v0 = vrot.slane %v2196_v60, 1  ;;  %v2301_v5 = vadd.f32 %v2300_v47, %v2299_v34 }
 0x37c   : > { %v2198_v42 = vadd.f32 %v2197_v0, %v2196_v60  ;;  %v2302_v25 = vrot.slane %v2301_v5, 1 }
 0x37e   : > { %v2199_v7 = vadd.f32 %v2198_v42, %v2129_v44  ;;  %v2303_v35 = vadd.f32 %v2302_v25, %v2301_v5 }
 0x380   : > { %2201 = vst.msk [vmem:[#allocation2] sm:$0x1] %vm2200_vm13, %v2199_v7  ;;  %v2304_v1 = vadd.f32 %v2303_v35, %v2202_v51 }
 0x381   : > { %2615 = shalt.err (!%p2612_p12)
}
 0x382   : > { %s2616_s29 = scalar_lea.hbm %s4628_s6, 16 }
 0x383   : > { %p2617_p13 = scmp.ne.s32.totalorder %s4628_s6, %s2616_s29  ;;  %p2622_p2 = scmp.lt.u32.totalorder %s2616_s29, %s4628_s6 }
 0x385   : > { %p2618_p0 = pnand %p2617_p13, %p2577_p5 }
 0x387   : > { %p2619_p1 = pneg %p2618_p0 }
 0x389   : > { %p2624_p3 = pnand %p2622_p2, %p2619_p1 }
 0x38b   : > { %2627 = shalt.err (!%p2624_p3)
}
 0x38c   : > { %2570 = dma.vmem_to_hbm [thread:$0]  (%p2577_p5), %s2322_s20, 16, %s4628_s6, [#allocation3]   ;;  %2305 = vst.msk [vmem:[#allocation4] sm:$0x1] %vm2200_vm13, %v2304_v1 }
 0x38d   : > { %s2628_s15 = scalar_lea.vmem %s4566_s22, 16  ;;  %s2634_s16 = scalar_lea.vmem %s4566_s22, 32 }
 0x38e   : > { %p2629_p4 = scmp.ne.s32.totalorder %s4566_s22, %s2628_s15  ;;  %p2635_p8 = scmp.lt.s32.totalorder %s4566_s22, %s4566_s22 }
 0x38f   : > { %p2636_p9 = scmp.lt.s32.totalorder %s2634_s16, %s2628_s15 }
 0x390   : > { %p2630_p6 = pnand %p2629_p4, %p2577_p5 }
 0x391   : > { %p2637_p10 = por %p2636_p9, %p2635_p8 }
 0x392   : > { %p2631_p7 = pneg %p2630_p6 }
 0x394   : > { %p2638_p11 = pnand %p2637_p10, %p2631_p7 }
 0x396   : > { %2641 = shalt.err (!%p2638_p11)
}
 0x397   : > { %s2642_s11 = scalar_lea.hbm %s4629_s7, 16 }
 0x398   : > { %p2643_p12 = scmp.ne.s32.totalorder %s4629_s7, %s2642_s11  ;;  %p2648_p1 = scmp.lt.u32.totalorder %s2642_s11, %s4629_s7 }
 0x39a   : > { %p2644_p13 = pnand %p2643_p12, %p2577_p5 }
 0x39c   : > { %p2645_p0 = pneg %p2644_p13 }
 0x39e   : > { %p2650_p2 = pnand %p2648_p1, %p2645_p0 }
 0x3a0   : > { %2653 = shalt.err (!%p2650_p2)
}
 0x3a1   : > { %2572 = dma.vmem_to_hbm [thread:$0]  (%p2577_p5), %s4566_s22, 16, %s4629_s7, [#allocation5]  }
 0x3a2   : > { %2659 = dma.done.wait (%p2577_p5), [#allocation3], 16  }
 0x3a3   : > { %2661 = vsyncadd (%p2577_p5), [#allocation3], 4294967280 }
 0x3a4   : > { %2663 = dma.done.wait (%p2577_p5), [#allocation5], 16  }
 0x3a5   : > { %2665 = vsyncadd (%p2577_p5), [#allocation5], 4294967280 }
 0x3a6 PF: > { %s20_s24 = sadd.s32 1, %s2668_s24  }
 0x3a7   : > { %p17_p3 = scmp.ge.s32.totalorder %s20_s24, 4  }
 0x3a9   :  { %19 = sbr.rel (!%p17_p3) target bundleno = 2 (0x2), region = 91 }
 0x3b0   :  { %2357 = vsyncpa [#allocation3], 1 }
 0x3b1   :  { %2359 = vsyncpa [#allocation3 + $0x1], 1 }
 0x3b2   :  { %2360 = vsyncpa [#allocation5], 1 }

</bundles_post_ra>
